<compile_context>
chip_gen: v7x
topology: tpu7x:2x2x1
jax: 0.10.0
libtpu: 0.0.40
codegen_flags: <defaults>
</compile_context>

<pallas_src>
import jax
import jax.numpy as jnp
from jax import lax
from jax.experimental import pallas as pl
from jax.experimental.pallas import tpu as pltpu

BP = 8  # per-timestep row block padded to the sublane tile (batch rows b >= B are garbage, ignored)


# ----------------------------- fused Pallas kernel ------------------------------

def _make_critic_kernel(num_layers, seq_total, batch_pad):
    """Fused critic kernel: embedding -> num_layers GRU (wavefront) -> value head."""
    L = num_layers
    T = seq_total

    def kernel(*refs):
        idx_ref = refs[0]                         # (T*BP, 1) int32, time-major padded actions
        layer_refs = refs[1:1 + 4 * L]            # per layer: w_in, bgi(8,3H), whh(H,3H), bgh(8,3H)
        vw_ref = refs[1 + 4 * L]                  # (H, 128)  value weight, lane-replicated
        vb_ref = refs[2 + 4 * L]                  # (BP, 128) value bias, replicated
        out_ref = refs[3 + 4 * L]                 # (T*BP, 128) lane-dense value output

        f32 = jnp.float32
        NR = idx_ref.shape[0]                     # T * BP

        # ---- hoisted per-layer reads (single vlds, reused by every unrolled step) ----
        W_in = [layer_refs[4 * l][...] for l in range(L)]       # l==0: (V,3H) folded emb@Wih0
        BGI = [layer_refs[4 * l + 1][...] for l in range(L)]    # (BP, 3H) input-side bias
        WHH = [layer_refs[4 * l + 2][...] for l in range(L)]    # (H, 3H)
        BGH = [layer_refs[4 * l + 3][...] for l in range(L)]    # (BP, 3H) hidden-side bias
        vw = vw_ref[...]
        vb = vb_ref[...]

        H = WHH[0].shape[0]
        H2 = 2 * H
        V = W_in[0].shape[0]

        # ---- embedding lookup folded into layer-0 input projection (bulk, off-chain) ----
        idx = idx_ref[...]                                               # (NR, 1) int32
        onehot = (lax.broadcasted_iota(jnp.int32, (NR, V), 1) == idx).astype(f32)
        gi0 = jnp.dot(onehot, W_in[0], preferred_element_type=f32)       # (NR, 3H)

        def gru_step(A, G, h_prev):
            # A = W_i x + b_i (packed r|z|n), G = W_h h + b_h (packed r|z|n)
            rz = jax.nn.sigmoid(A[:, :H2] + G[:, :H2])        # fused r/z sigmoid (one EUP push)
            r = rz[:, :H]
            z = rz[:, H:]
            n = jnp.tanh(A[:, H2:] + r * G[:, H2:])
            return n + z * (h_prev - n)                       # (1-z)*n + z*h

        # ---- wavefront-scheduled recurrence over (layer, time); all state stays in vregs ----
        h = [jnp.zeros((batch_pad, H), f32) for _ in range(L)]   # zero_state
        prev_out = [None] * L                                    # most recent output per layer

        for w in range(T + L - 1):
            # descending layer order so layer l reads layer l-1's output from wave w-1
            for l in range(L - 1, -1, -1):
                t = w - l
                if t < 0 or t >= T:
                    continue
                if l == 0:
                    A = gi0[t * batch_pad:(t + 1) * batch_pad, :] + BGI[0]   # aligned 8-row slice
                else:
                    A = jnp.dot(prev_out[l - 1], W_in[l],
                                preferred_element_type=f32) + BGI[l]
                G = jnp.dot(h[l], WHH[l], preferred_element_type=f32) + BGH[l]
                h_new = gru_step(A, G, h[l])
                h[l] = h_new
                prev_out[l] = h_new
                if l == L - 1:
                    # value head: per-step matmul (off the chain) + aligned unmasked store
                    out_ref[t * batch_pad:(t + 1) * batch_pad, :] = (
                        jnp.dot(h_new, vw, preferred_element_type=f32) + vb)
        # TODO(synk): inter-layer dropout (opt.critic_dropout) skipped — eval semantics.
        # NOTE: if seq_len ever grows large, replace the full unroll with lax.fori_loop(unroll=4..8).

    return kernel


# ------------------------------ JAX wrappers --------------------------------

def prepare_params(params):
    """One-time weight re-layout: lane-packed gates, folded embedding, pre-broadcast biases."""
    H = params["gru"][0]["w_hh"].shape[1]
    emb = params["embedding"].astype(jnp.float32)
    layers = []
    for li, lyr in enumerate(params["gru"]):
        w_ih = lyr["w_ih"].astype(jnp.float32)      # (3H, In), gates stacked [r|z|n]
        w_hh = lyr["w_hh"].astype(jnp.float32)      # (3H, H)
        b_ih = lyr["b_ih"].astype(jnp.float32)      # (3H,)
        b_hh = lyr["b_hh"].astype(jnp.float32)
        wih = w_ih.T                                # (In, 3H) lane-packed
        whh = w_hh.T                                # (H, 3H)  lane-packed
        w_in = emb @ wih if li == 0 else wih        # fold embedding into layer-0 projection
        bgi = jnp.broadcast_to(b_ih.reshape(1, 3 * H), (BP, 3 * H))   # pre-broadcast (hoisted)
        bgh = jnp.broadcast_to(b_hh.reshape(1, 3 * H), (BP, 3 * H))
        layers.append({"w_in": w_in, "bgi": bgi, "whh": whh, "bgh": bgh})
    vw = jnp.broadcast_to(params["value_w"].reshape(H, 1).astype(jnp.float32), (H, 128))
    vb = jnp.full((BP, 128), jnp.asarray(params["value_b"], jnp.float32).reshape(()), jnp.float32)
    return {"layers": layers, "vw": vw, "vb": vb}


@jax.jit
def critic_forward(prep, actions):
    """actions: (batch_size, seq_len) int32 -> value: (batch_size, seq_len) float32."""
    B, T = actions.shape
    T_total = T + 1
    NR = T_total * BP

    # padded_actions = cat([zero_input, actions], dim=1); time-major, sublane-padded to 8 rows/step.
    act_pad = jnp.zeros((T_total, BP), jnp.int32).at[1:, :B].set(actions.T.astype(jnp.int32))
    idx = act_pad.reshape(NR, 1)

    L = len(prep["layers"])
    kernel = _make_critic_kernel(L, T_total, BP)

    args = [idx]
    for lyr in prep["layers"]:
        args += [lyr["w_in"], lyr["bgi"], lyr["whh"], lyr["bgh"]]
    args += [prep["vw"], prep["vb"]]

    vmem = pl.BlockSpec(memory_space=pltpu.MemorySpace.VMEM)
    out = pl.pallas_call(
        kernel,
        out_shape=jax.ShapeDtypeStruct((NR, 128), jnp.float32),
        in_specs=[vmem] * len(args),
        out_specs=vmem,
        # NOTE(v7x): if batch ever grows, add a grid over batch blocks with
        # dimension_semantics=("parallel",) to use the second TensorCore; at B=2 leave grid-less.
    )(*args)

    value = out[:, 0].reshape(T_total, BP)[:, :B].T      # (B, T+1)
    return value[:, :-1]                                 # (B, T)


# --------------------------- pure-JAX reference ------------------------------

def critic_reference(params, actions):
    B, T = actions.shape
    padded = jnp.concatenate([jnp.zeros((B, 1), dtype=actions.dtype), actions], axis=1)
    x = params["embedding"][padded].astype(jnp.float32)        # (B, T+1, E)
    H = params["gru"][0]["w_hh"].shape[1]
    for layer in params["gru"]:
        w_ih, w_hh = layer["w_ih"], layer["w_hh"]
        b_ih, b_hh = layer["b_ih"], layer["b_hh"]

        def step(h, x_t):
            gi = x_t @ w_ih.T + b_ih
            gh = h @ w_hh.T + b_hh
            r = jax.nn.sigmoid(gi[:, :H] + gh[:, :H])
            z = jax.nn.sigmoid(gi[:, H:2 * H] + gh[:, H:2 * H])
            n = jnp.tanh(gi[:, 2 * H:] + r * gh[:, 2 * H:])
            h_new = (1.0 - z) * n + z * h
            return h_new, h_new

        h0 = jnp.zeros((B, H), jnp.float32)
        _, ys = lax.scan(step, h0, jnp.transpose(x, (1, 0, 2)))
        x = jnp.transpose(ys, (1, 0, 2))
    flat = x.reshape(-1, H)
    v = flat @ params["value_w"] + params["value_b"][0, 0]
    return v.reshape(B, T + 1)[:, :-1]


# --------------------------------- main --------------------------------------

def init_params(key, vocab_size, emb_size, hidden_size, num_layers):
    keys = jax.random.split(key, 3 + 4 * num_layers)
    k = 1.0 / jnp.sqrt(hidden_size)
    params = {}
    params["embedding"] = jax.random.normal(keys[0], (vocab_size, emb_size), jnp.float32)
    gru = []
    for l in range(num_layers):
        in_size = emb_size if l == 0 else hidden_size
        kw = keys[3 + 4 * l: 3 + 4 * (l + 1)]
        gru.append({
            "w_ih": jax.random.uniform(kw[0], (3 * hidden_size, in_size), jnp.float32, -k, k),
            "w_hh": jax.random.uniform(kw[1], (3 * hidden_size, hidden_size), jnp.float32, -k, k),
            "b_ih": jax.random.uniform(kw[2], (3 * hidden_size,), jnp.float32, -k, k),
            "b_hh": jax.random.uniform(kw[3], (3 * hidden_size,), jnp.float32, -k, k),
        })
    params["gru"] = gru
    params["value_w"] = jax.random.uniform(keys[1], (hidden_size, 1), jnp.float32, -k, k)
    params["value_b"] = jax.random.uniform(keys[2], (1, 1), jnp.float32, -k, k)
    return params


if __name__ == "__main__":
    # opt: vocab_size=10, emb_size=32, critic_hidden_size=32, critic_layers=2,
    #      critic_dropout=0.0, batch_size=2, seq_len=8
    vocab_size, emb_size, hidden_size, num_layers = 10, 32, 32, 2
    batch_size, seq_len = 2, 8

    key = jax.random.PRNGKey(0)
    pkey, akey = jax.random.split(key)
    params = init_params(pkey, vocab_size, emb_size, hidden_size, num_layers)
    actions = jax.random.randint(akey, (batch_size, seq_len), 0, vocab_size, dtype=jnp.int32)

    prep = prepare_params(params)
    value = jax.block_until_ready(critic_forward(prep, actions))
    assert value.shape == (batch_size, seq_len), value.shape

    ref = jax.block_until_ready(critic_reference(params, actions))
    assert jnp.allclose(value, ref, rtol=1e-4, atol=1e-4), (value, ref)

    print("KERNEL_OK")
</pallas_src>

<mosaic_0001>
module attributes {stable_mosaic.version = 11 : i64} {
  func.func @kernel(%arg0: memref<72x1xi32, #tpu.memory_space<vmem>>, %arg1: memref<10x96xf32, #tpu.memory_space<vmem>>, %arg2: memref<8x96xf32, #tpu.memory_space<vmem>>, %arg3: memref<32x96xf32, #tpu.memory_space<vmem>>, %arg4: memref<8x96xf32, #tpu.memory_space<vmem>>, %arg5: memref<32x96xf32, #tpu.memory_space<vmem>>, %arg6: memref<8x96xf32, #tpu.memory_space<vmem>>, %arg7: memref<32x96xf32, #tpu.memory_space<vmem>>, %arg8: memref<8x96xf32, #tpu.memory_space<vmem>>, %arg9: memref<32x128xf32, #tpu.memory_space<vmem>>, %arg10: memref<8x128xf32, #tpu.memory_space<vmem>>, %arg11: memref<72x128xf32, #tpu.memory_space<vmem>>) attributes {dimension_semantics = [], scalar_prefetch = 0 : i64, scratch_operands = 0 : i64, tpu.core_type = #tpu.core_type<tc>} {
    %c0 = arith.constant 0 : index
    %c0_0 = arith.constant 0 : index
    %0 = vector.load %arg1[%c0, %c0_0] : memref<10x96xf32, #tpu.memory_space<vmem>>, vector<10x96xf32>
    %c0_1 = arith.constant 0 : index
    %c0_2 = arith.constant 0 : index
    %1 = vector.load %arg5[%c0_1, %c0_2] : memref<32x96xf32, #tpu.memory_space<vmem>>, vector<32x96xf32>
    %c0_3 = arith.constant 0 : index
    %c0_4 = arith.constant 0 : index
    %2 = vector.load %arg2[%c0_3, %c0_4] : memref<8x96xf32, #tpu.memory_space<vmem>>, vector<8x96xf32>
    %c0_5 = arith.constant 0 : index
    %c0_6 = arith.constant 0 : index
    %3 = vector.load %arg6[%c0_5, %c0_6] : memref<8x96xf32, #tpu.memory_space<vmem>>, vector<8x96xf32>
    %c0_7 = arith.constant 0 : index
    %c0_8 = arith.constant 0 : index
    %4 = vector.load %arg3[%c0_7, %c0_8] : memref<32x96xf32, #tpu.memory_space<vmem>>, vector<32x96xf32>
    %c0_9 = arith.constant 0 : index
    %c0_10 = arith.constant 0 : index
    %5 = vector.load %arg7[%c0_9, %c0_10] : memref<32x96xf32, #tpu.memory_space<vmem>>, vector<32x96xf32>
    %c0_11 = arith.constant 0 : index
    %c0_12 = arith.constant 0 : index
    %6 = vector.load %arg4[%c0_11, %c0_12] : memref<8x96xf32, #tpu.memory_space<vmem>>, vector<8x96xf32>
    %c0_13 = arith.constant 0 : index
    %c0_14 = arith.constant 0 : index
    %7 = vector.load %arg8[%c0_13, %c0_14] : memref<8x96xf32, #tpu.memory_space<vmem>>, vector<8x96xf32>
    %c0_15 = arith.constant 0 : index
    %c0_16 = arith.constant 0 : index
    %8 = vector.load %arg9[%c0_15, %c0_16] : memref<32x128xf32, #tpu.memory_space<vmem>>, vector<32x128xf32>
    %c0_17 = arith.constant 0 : index
    %c0_18 = arith.constant 0 : index
    %9 = vector.load %arg10[%c0_17, %c0_18] : memref<8x128xf32, #tpu.memory_space<vmem>>, vector<8x128xf32>
    %c0_19 = arith.constant 0 : index
    %c0_20 = arith.constant 0 : index
    %10 = vector.load %arg0[%c0_19, %c0_20] : memref<72x1xi32, #tpu.memory_space<vmem>>, vector<72x1xi32>
    %11 = tpu.iota {dimensions = array<i32: 1>} : vector<72x10xi32>
    %12 = vector.broadcast %10 : vector<72x1xi32> to vector<72x10xi32>
    %13 = arith.cmpi eq, %11, %12 : vector<72x10xi32>
    %14 = arith.extui %13 : vector<72x10xi1> to vector<72x10xi32>
    %15 = arith.sitofp %14 : vector<72x10xi32> to vector<72x10xf32>
    %cst = arith.constant dense<0.000000e+00> : vector<72x96xf32>
    %16 = tpu.matmul %15, %0, %cst {dimension_numbers = #tpu.dot_dimension_numbers<[1], [0], [0], [1], [0, 0, 1, 1], [], []>} : vector<72x10xf32>, vector<10x96xf32>, vector<72x96xf32> -> vector<72x96xf32>
    %cst_21 = arith.constant 0.000000e+00 : f32
    %17 = vector.broadcast %cst_21 : f32 to vector<8x32xf32>
    %cst_22 = arith.constant 0.000000e+00 : f32
    %18 = vector.broadcast %cst_22 : f32 to vector<8x32xf32>
    %19 = vector.extract_strided_slice %16 {offsets = [0, 0], sizes = [8, 96], strides = [1, 1]} : vector<72x96xf32> to vector<8x96xf32>
    %20 = arith.addf %19, %2 : vector<8x96xf32>
    %cst_23 = arith.constant dense<0.000000e+00> : vector<8x96xf32>
    %21 = tpu.matmul %17, %4, %cst_23 {dimension_numbers = #tpu.dot_dimension_numbers<[1], [0], [0], [1], [0, 0, 1, 1], [], []>} : vector<8x32xf32>, vector<32x96xf32>, vector<8x96xf32> -> vector<8x96xf32>
    %22 = arith.addf %21, %6 : vector<8x96xf32>
    %23 = vector.extract_strided_slice %20 {offsets = [0, 0], sizes = [8, 64], strides = [1, 1]} : vector<8x96xf32> to vector<8x64xf32>
    %24 = vector.extract_strided_slice %22 {offsets = [0, 0], sizes = [8, 64], strides = [1, 1]} : vector<8x96xf32> to vector<8x64xf32>
    %25 = arith.addf %23, %24 : vector<8x64xf32>
    %26 = arith.negf %25 : vector<8x64xf32>
    %27 = math.exp %26 : vector<8x64xf32>
    %cst_24 = arith.constant 1.000000e+00 : f32
    %28 = vector.broadcast %cst_24 : f32 to vector<8x64xf32>
    %29 = arith.addf %28, %27 : vector<8x64xf32>
    %30 = arith.divf %28, %29 : vector<8x64xf32>
    %31 = vector.extract_strided_slice %30 {offsets = [0, 0], sizes = [8, 32], strides = [1, 1]} : vector<8x64xf32> to vector<8x32xf32>
    %32 = vector.extract_strided_slice %30 {offsets = [0, 32], sizes = [8, 32], strides = [1, 1]} : vector<8x64xf32> to vector<8x32xf32>
    %33 = vector.extract_strided_slice %20 {offsets = [0, 64], sizes = [8, 32], strides = [1, 1]} : vector<8x96xf32> to vector<8x32xf32>
    %34 = vector.extract_strided_slice %22 {offsets = [0, 64], sizes = [8, 32], strides = [1, 1]} : vector<8x96xf32> to vector<8x32xf32>
    %35 = arith.mulf %31, %34 : vector<8x32xf32>
    %36 = arith.addf %33, %35 : vector<8x32xf32>
    %37 = math.tanh %36 : vector<8x32xf32>
    %38 = arith.subf %17, %37 : vector<8x32xf32>
    %39 = arith.mulf %32, %38 : vector<8x32xf32>
    %40 = arith.addf %37, %39 : vector<8x32xf32>
    %cst_25 = arith.constant dense<0.000000e+00> : vector<8x96xf32>
    %41 = tpu.matmul %40, %1, %cst_25 {dimension_numbers = #tpu.dot_dimension_numbers<[1], [0], [0], [1], [0, 0, 1, 1], [], []>} : vector<8x32xf32>, vector<32x96xf32>, vector<8x96xf32> -> vector<8x96xf32>
    %42 = arith.addf %41, %3 : vector<8x96xf32>
    %cst_26 = arith.constant dense<0.000000e+00> : vector<8x96xf32>
    %43 = tpu.matmul %18, %5, %cst_26 {dimension_numbers = #tpu.dot_dimension_numbers<[1], [0], [0], [1], [0, 0, 1, 1], [], []>} : vector<8x32xf32>, vector<32x96xf32>, vector<8x96xf32> -> vector<8x96xf32>
    %44 = arith.addf %43, %7 : vector<8x96xf32>
    %45 = vector.extract_strided_slice %42 {offsets = [0, 0], sizes = [8, 64], strides = [1, 1]} : vector<8x96xf32> to vector<8x64xf32>
    %46 = vector.extract_strided_slice %44 {offsets = [0, 0], sizes = [8, 64], strides = [1, 1]} : vector<8x96xf32> to vector<8x64xf32>
    %47 = arith.addf %45, %46 : vector<8x64xf32>
    %48 = arith.negf %47 : vector<8x64xf32>
    %49 = math.exp %48 : vector<8x64xf32>
    %cst_27 = arith.constant 1.000000e+00 : f32
    %50 = vector.broadcast %cst_27 : f32 to vector<8x64xf32>
    %51 = arith.addf %50, %49 : vector<8x64xf32>
    %52 = arith.divf %50, %51 : vector<8x64xf32>
    %53 = vector.extract_strided_slice %52 {offsets = [0, 0], sizes = [8, 32], strides = [1, 1]} : vector<8x64xf32> to vector<8x32xf32>
    %54 = vector.extract_strided_slice %52 {offsets = [0, 32], sizes = [8, 32], strides = [1, 1]} : vector<8x64xf32> to vector<8x32xf32>
    %55 = vector.extract_strided_slice %42 {offsets = [0, 64], sizes = [8, 32], strides = [1, 1]} : vector<8x96xf32> to vector<8x32xf32>
    %56 = vector.extract_strided_slice %44 {offsets = [0, 64], sizes = [8, 32], strides = [1, 1]} : vector<8x96xf32> to vector<8x32xf32>
    %57 = arith.mulf %53, %56 : vector<8x32xf32>
    %58 = arith.addf %55, %57 : vector<8x32xf32>
    %59 = math.tanh %58 : vector<8x32xf32>
    %60 = arith.subf %18, %59 : vector<8x32xf32>
    %61 = arith.mulf %54, %60 : vector<8x32xf32>
    %62 = arith.addf %59, %61 : vector<8x32xf32>
    %cst_28 = arith.constant dense<0.000000e+00> : vector<8x128xf32>
    %63 = tpu.matmul %62, %8, %cst_28 {dimension_numbers = #tpu.dot_dimension_numbers<[1], [0], [0], [1], [0, 0, 1, 1], [], []>} : vector<8x32xf32>, vector<32x128xf32>, vector<8x128xf32> -> vector<8x128xf32>
    %64 = arith.addf %63, %9 : vector<8x128xf32>
    %c0_29 = arith.constant 0 : index
    %c0_30 = arith.constant 0 : index
    %65 = vector.load %arg11[%c0_29, %c0_30] : memref<72x128xf32, #tpu.memory_space<vmem>>, vector<8x128xf32>
    tpu.vector_store %arg11[%c0_29, %c0_30], %64 {strides = array<i32>} : memref<72x128xf32, #tpu.memory_space<vmem>>, vector<8x128xf32>,
    %66 = vector.extract_strided_slice %16 {offsets = [8, 0], sizes = [8, 96], strides = [1, 1]} : vector<72x96xf32> to vector<8x96xf32>
    %67 = arith.addf %66, %2 : vector<8x96xf32>
    %cst_31 = arith.constant dense<0.000000e+00> : vector<8x96xf32>
    %68 = tpu.matmul %40, %4, %cst_31 {dimension_numbers = #tpu.dot_dimension_numbers<[1], [0], [0], [1], [0, 0, 1, 1], [], []>} : vector<8x32xf32>, vector<32x96xf32>, vector<8x96xf32> -> vector<8x96xf32>
    %69 = arith.addf %68, %6 : vector<8x96xf32>
    %70 = vector.extract_strided_slice %67 {offsets = [0, 0], sizes = [8, 64], strides = [1, 1]} : vector<8x96xf32> to vector<8x64xf32>
    %71 = vector.extract_strided_slice %69 {offsets = [0, 0], sizes = [8, 64], strides = [1, 1]} : vector<8x96xf32> to vector<8x64xf32>
    %72 = arith.addf %70, %71 : vector<8x64xf32>
    %73 = arith.negf %72 : vector<8x64xf32>
    %74 = math.exp %73 : vector<8x64xf32>
    %cst_32 = arith.constant 1.000000e+00 : f32
    %75 = vector.broadcast %cst_32 : f32 to vector<8x64xf32>
    %76 = arith.addf %75, %74 : vector<8x64xf32>
    %77 = arith.divf %75, %76 : vector<8x64xf32>
    %78 = vector.extract_strided_slice %77 {offsets = [0, 0], sizes = [8, 32], strides = [1, 1]} : vector<8x64xf32> to vector<8x32xf32>
    %79 = vector.extract_strided_slice %77 {offsets = [0, 32], sizes = [8, 32], strides = [1, 1]} : vector<8x64xf32> to vector<8x32xf32>
    %80 = vector.extract_strided_slice %67 {offsets = [0, 64], sizes = [8, 32], strides = [1, 1]} : vector<8x96xf32> to vector<8x32xf32>
    %81 = vector.extract_strided_slice %69 {offsets = [0, 64], sizes = [8, 32], strides = [1, 1]} : vector<8x96xf32> to vector<8x32xf32>
    %82 = arith.mulf %78, %81 : vector<8x32xf32>
    %83 = arith.addf %80, %82 : vector<8x32xf32>
    %84 = math.tanh %83 : vector<8x32xf32>
    %85 = arith.subf %40, %84 : vector<8x32xf32>
    %86 = arith.mulf %79, %85 : vector<8x32xf32>
    %87 = arith.addf %84, %86 : vector<8x32xf32>
    %cst_33 = arith.constant dense<0.000000e+00> : vector<8x96xf32>
    %88 = tpu.matmul %87, %1, %cst_33 {dimension_numbers = #tpu.dot_dimension_numbers<[1], [0], [0], [1], [0, 0, 1, 1], [], []>} : vector<8x32xf32>, vector<32x96xf32>, vector<8x96xf32> -> vector<8x96xf32>
    %89 = arith.addf %88, %3 : vector<8x96xf32>
    %cst_34 = arith.constant dense<0.000000e+00> : vector<8x96xf32>
    %90 = tpu.matmul %62, %5, %cst_34 {dimension_numbers = #tpu.dot_dimension_numbers<[1], [0], [0], [1], [0, 0, 1, 1], [], []>} : vector<8x32xf32>, vector<32x96xf32>, vector<8x96xf32> -> vector<8x96xf32>
    %91 = arith.addf %90, %7 : vector<8x96xf32>
    %92 = vector.extract_strided_slice %89 {offsets = [0, 0], sizes = [8, 64], strides = [1, 1]} : vector<8x96xf32> to vector<8x64xf32>
    %93 = vector.extract_strided_slice %91 {offsets = [0, 0], sizes = [8, 64], strides = [1, 1]} : vector<8x96xf32> to vector<8x64xf32>
    %94 = arith.addf %92, %93 : vector<8x64xf32>
    %95 = arith.negf %94 : vector<8x64xf32>
    %96 = math.exp %95 : vector<8x64xf32>
    %cst_35 = arith.constant 1.000000e+00 : f32
    %97 = vector.broadcast %cst_35 : f32 to vector<8x64xf32>
    %98 = arith.addf %97, %96 : vector<8x64xf32>
    %99 = arith.divf %97, %98 : vector<8x64xf32>
    %100 = vector.extract_strided_slice %99 {offsets = [0, 0], sizes = [8, 32], strides = [1, 1]} : vector<8x64xf32> to vector<8x32xf32>
    %101 = vector.extract_strided_slice %99 {offsets = [0, 32], sizes = [8, 32], strides = [1, 1]} : vector<8x64xf32> to vector<8x32xf32>
    %102 = vector.extract_strided_slice %89 {offsets = [0, 64], sizes = [8, 32], strides = [1, 1]} : vector<8x96xf32> to vector<8x32xf32>
    %103 = vector.extract_strided_slice %91 {offsets = [0, 64], sizes = [8, 32], strides = [1, 1]} : vector<8x96xf32> to vector<8x32xf32>
    %104 = arith.mulf %100, %103 : vector<8x32xf32>
    %105 = arith.addf %102, %104 : vector<8x32xf32>
    %106 = math.tanh %105 : vector<8x32xf32>
    %107 = arith.subf %62, %106 : vector<8x32xf32>
    %108 = arith.mulf %101, %107 : vector<8x32xf32>
    %109 = arith.addf %106, %108 : vector<8x32xf32>
    %cst_36 = arith.constant dense<0.000000e+00> : vector<8x128xf32>
    %110 = tpu.matmul %109, %8, %cst_36 {dimension_numbers = #tpu.dot_dimension_numbers<[1], [0], [0], [1], [0, 0, 1, 1], [], []>} : vector<8x32xf32>, vector<32x128xf32>, vector<8x128xf32> -> vector<8x128xf32>
    %111 = arith.addf %110, %9 : vector<8x128xf32>
    %c8 = arith.constant 8 : index
    %c0_37 = arith.constant 0 : index
    %112 = vector.load %arg11[%c8, %c0_37] : memref<72x128xf32, #tpu.memory_space<vmem>>, vector<8x128xf32>
    tpu.vector_store %arg11[%c8, %c0_37], %111 {strides = array<i32>} : memref<72x128xf32, #tpu.memory_space<vmem>>, vector<8x128xf32>,
    %113 = vector.extract_strided_slice %16 {offsets = [16, 0], sizes = [8, 96], strides = [1, 1]} : vector<72x96xf32> to vector<8x96xf32>
    %114 = arith.addf %113, %2 : vector<8x96xf32>
    %cst_38 = arith.constant dense<0.000000e+00> : vector<8x96xf32>
    %115 = tpu.matmul %87, %4, %cst_38 {dimension_numbers = #tpu.dot_dimension_numbers<[1], [0], [0], [1], [0, 0, 1, 1], [], []>} : vector<8x32xf32>, vector<32x96xf32>, vector<8x96xf32> -> vector<8x96xf32>
    %116 = arith.addf %115, %6 : vector<8x96xf32>
    %117 = vector.extract_strided_slice %114 {offsets = [0, 0], sizes = [8, 64], strides = [1, 1]} : vector<8x96xf32> to vector<8x64xf32>
    %118 = vector.extract_strided_slice %116 {offsets = [0, 0], sizes = [8, 64], strides = [1, 1]} : vector<8x96xf32> to vector<8x64xf32>
    %119 = arith.addf %117, %118 : vector<8x64xf32>
    %120 = arith.negf %119 : vector<8x64xf32>
    %121 = math.exp %120 : vector<8x64xf32>
    %cst_39 = arith.constant 1.000000e+00 : f32
    %122 = vector.broadcast %cst_39 : f32 to vector<8x64xf32>
    %123 = arith.addf %122, %121 : vector<8x64xf32>
    %124 = arith.divf %122, %123 : vector<8x64xf32>
    %125 = vector.extract_strided_slice %124 {offsets = [0, 0], sizes = [8, 32], strides = [1, 1]} : vector<8x64xf32> to vector<8x32xf32>
    %126 = vector.extract_strided_slice %124 {offsets = [0, 32], sizes = [8, 32], strides = [1, 1]} : vector<8x64xf32> to vector<8x32xf32>
    %127 = vector.extract_strided_slice %114 {offsets = [0, 64], sizes = [8, 32], strides = [1, 1]} : vector<8x96xf32> to vector<8x32xf32>
    %128 = vector.extract_strided_slice %116 {offsets = [0, 64], sizes = [8, 32], strides = [1, 1]} : vector<8x96xf32> to vector<8x32xf32>
    %129 = arith.mulf %125, %128 : vector<8x32xf32>
    %130 = arith.addf %127, %129 : vector<8x32xf32>
    %131 = math.tanh %130 : vector<8x32xf32>
    %132 = arith.subf %87, %131 : vector<8x32xf32>
    %133 = arith.mulf %126, %132 : vector<8x32xf32>
    %134 = arith.addf %131, %133 : vector<8x32xf32>
    %cst_40 = arith.constant dense<0.000000e+00> : vector<8x96xf32>
    %135 = tpu.matmul %134, %1, %cst_40 {dimension_numbers = #tpu.dot_dimension_numbers<[1], [0], [0], [1], [0, 0, 1, 1], [], []>} : vector<8x32xf32>, vector<32x96xf32>, vector<8x96xf32> -> vector<8x96xf32>
    %136 = arith.addf %135, %3 : vector<8x96xf32>
    %cst_41 = arith.constant dense<0.000000e+00> : vector<8x96xf32>
    %137 = tpu.matmul %109, %5, %cst_41 {dimension_numbers = #tpu.dot_dimension_numbers<[1], [0], [0], [1], [0, 0, 1, 1], [], []>} : vector<8x32xf32>, vector<32x96xf32>, vector<8x96xf32> -> vector<8x96xf32>
    %138 = arith.addf %137, %7 : vector<8x96xf32>
    %139 = vector.extract_strided_slice %136 {offsets = [0, 0], sizes = [8, 64], strides = [1, 1]} : vector<8x96xf32> to vector<8x64xf32>
    %140 = vector.extract_strided_slice %138 {offsets = [0, 0], sizes = [8, 64], strides = [1, 1]} : vector<8x96xf32> to vector<8x64xf32>
    %141 = arith.addf %139, %140 : vector<8x64xf32>
    %142 = arith.negf %141 : vector<8x64xf32>
    %143 = math.exp %142 : vector<8x64xf32>
    %cst_42 = arith.constant 1.000000e+00 : f32
    %144 = vector.broadcast %cst_42 : f32 to vector<8x64xf32>
    %145 = arith.addf %144, %143 : vector<8x64xf32>
    %146 = arith.divf %144, %145 : vector<8x64xf32>
    %147 = vector.extract_strided_slice %146 {offsets = [0, 0], sizes = [8, 32], strides = [1, 1]} : vector<8x64xf32> to vector<8x32xf32>
    %148 = vector.extract_strided_slice %146 {offsets = [0, 32], sizes = [8, 32], strides = [1, 1]} : vector<8x64xf32> to vector<8x32xf32>
    %149 = vector.extract_strided_slice %136 {offsets = [0, 64], sizes = [8, 32], strides = [1, 1]} : vector<8x96xf32> to vector<8x32xf32>
    %150 = vector.extract_strided_slice %138 {offsets = [0, 64], sizes = [8, 32], strides = [1, 1]} : vector<8x96xf32> to vector<8x32xf32>
    %151 = arith.mulf %147, %150 : vector<8x32xf32>
    %152 = arith.addf %149, %151 : vector<8x32xf32>
    %153 = math.tanh %152 : vector<8x32xf32>
    %154 = arith.subf %109, %153 : vector<8x32xf32>
    %155 = arith.mulf %148, %154 : vector<8x32xf32>
    %156 = arith.addf %153, %155 : vector<8x32xf32>
    %cst_43 = arith.constant dense<0.000000e+00> : vector<8x128xf32>
    %157 = tpu.matmul %156, %8, %cst_43 {dimension_numbers = #tpu.dot_dimension_numbers<[1], [0], [0], [1], [0, 0, 1, 1], [], []>} : vector<8x32xf32>, vector<32x128xf32>, vector<8x128xf32> -> vector<8x128xf32>
    %158 = arith.addf %157, %9 : vector<8x128xf32>
    %c16 = arith.constant 16 : index
    %c0_44 = arith.constant 0 : index
    %159 = vector.load %arg11[%c16, %c0_44] : memref<72x128xf32, #tpu.memory_space<vmem>>, vector<8x128xf32>
    tpu.vector_store %arg11[%c16, %c0_44], %158 {strides = array<i32>} : memref<72x128xf32, #tpu.memory_space<vmem>>, vector<8x128xf32>,
    %160 = vector.extract_strided_slice %16 {offsets = [24, 0], sizes = [8, 96], strides = [1, 1]} : vector<72x96xf32> to vector<8x96xf32>
    %161 = arith.addf %160, %2 : vector<8x96xf32>
    %cst_45 = arith.constant dense<0.000000e+00> : vector<8x96xf32>
    %162 = tpu.matmul %134, %4, %cst_45 {dimension_numbers = #tpu.dot_dimension_numbers<[1], [0], [0], [1], [0, 0, 1, 1], [], []>} : vector<8x32xf32>, vector<32x96xf32>, vector<8x96xf32> -> vector<8x96xf32>
    %163 = arith.addf %162, %6 : vector<8x96xf32>
    %164 = vector.extract_strided_slice %161 {offsets = [0, 0], sizes = [8, 64], strides = [1, 1]} : vector<8x96xf32> to vector<8x64xf32>
    %165 = vector.extract_strided_slice %163 {offsets = [0, 0], sizes = [8, 64], strides = [1, 1]} : vector<8x96xf32> to vector<8x64xf32>
    %166 = arith.addf %164, %165 : vector<8x64xf32>
    %167 = arith.negf %166 : vector<8x64xf32>
    %168 = math.exp %167 : vector<8x64xf32>
    %cst_46 = arith.constant 1.000000e+00 : f32
    %169 = vector.broadcast %cst_46 : f32 to vector<8x64xf32>
    %170 = arith.addf %169, %168 : vector<8x64xf32>
    %171 = arith.divf %169, %170 : vector<8x64xf32>
    %172 = vector.extract_strided_slice %171 {offsets = [0, 0], sizes = [8, 32], strides = [1, 1]} : vector<8x64xf32> to vector<8x32xf32>
    %173 = vector.extract_strided_slice %171 {offsets = [0, 32], sizes = [8, 32], strides = [1, 1]} : vector<8x64xf32> to vector<8x32xf32>
    %174 = vector.extract_strided_slice %161 {offsets = [0, 64], sizes = [8, 32], strides = [1, 1]} : vector<8x96xf32> to vector<8x32xf32>
    %175 = vector.extract_strided_slice %163 {offsets = [0, 64], sizes = [8, 32], strides = [1, 1]} : vector<8x96xf32> to vector<8x32xf32>
    %176 = arith.mulf %172, %175 : vector<8x32xf32>
    %177 = arith.addf %174, %176 : vector<8x32xf32>
    %178 = math.tanh %177 : vector<8x32xf32>
    %179 = arith.subf %134, %178 : vector<8x32xf32>
    %180 = arith.mulf %173, %179 : vector<8x32xf32>
    %181 = arith.addf %178, %180 : vector<8x32xf32>
    %cst_47 = arith.constant dense<0.000000e+00> : vector<8x96xf32>
    %182 = tpu.matmul %181, %1, %cst_47 {dimension_numbers = #tpu.dot_dimension_numbers<[1], [0], [0], [1], [0, 0, 1, 1], [], []>} : vector<8x32xf32>, vector<32x96xf32>, vector<8x96xf32> -> vector<8x96xf32>
    %183 = arith.addf %182, %3 : vector<8x96xf32>
    %cst_48 = arith.constant dense<0.000000e+00> : vector<8x96xf32>
    %184 = tpu.matmul %156, %5, %cst_48 {dimension_numbers = #tpu.dot_dimension_numbers<[1], [0], [0], [1], [0, 0, 1, 1], [], []>} : vector<8x32xf32>, vector<32x96xf32>, vector<8x96xf32> -> vector<8x96xf32>
    %185 = arith.addf %184, %7 : vector<8x96xf32>
    %186 = vector.extract_strided_slice %183 {offsets = [0, 0], sizes = [8, 64], strides = [1, 1]} : vector<8x96xf32> to vector<8x64xf32>
    %187 = vector.extract_strided_slice %185 {offsets = [0, 0], sizes = [8, 64], strides = [1, 1]} : vector<8x96xf32> to vector<8x64xf32>
    %188 = arith.addf %186, %187 : vector<8x64xf32>
    %189 = arith.negf %188 : vector<8x64xf32>
    %190 = math.exp %189 : vector<8x64xf32>
    %cst_49 = arith.constant 1.000000e+00 : f32
    %191 = vector.broadcast %cst_49 : f32 to vector<8x64xf32>
    %192 = arith.addf %191, %190 : vector<8x64xf32>
    %193 = arith.divf %191, %192 : vector<8x64xf32>
    %194 = vector.extract_strided_slice %193 {offsets = [0, 0], sizes = [8, 32], strides = [1, 1]} : vector<8x64xf32> to vector<8x32xf32>
    %195 = vector.extract_strided_slice %193 {offsets = [0, 32], sizes = [8, 32], strides = [1, 1]} : vector<8x64xf32> to vector<8x32xf32>
    %196 = vector.extract_strided_slice %183 {offsets = [0, 64], sizes = [8, 32], strides = [1, 1]} : vector<8x96xf32> to vector<8x32xf32>
    %197 = vector.extract_strided_slice %185 {offsets = [0, 64], sizes = [8, 32], strides = [1, 1]} : vector<8x96xf32> to vector<8x32xf32>
    %198 = arith.mulf %194, %197 : vector<8x32xf32>
    %199 = arith.addf %196, %198 : vector<8x32xf32>
    %200 = math.tanh %199 : vector<8x32xf32>
    %201 = arith.subf %156, %200 : vector<8x32xf32>
    %202 = arith.mulf %195, %201 : vector<8x32xf32>
    %203 = arith.addf %200, %202 : vector<8x32xf32>
    %cst_50 = arith.constant dense<0.000000e+00> : vector<8x128xf32>
    %204 = tpu.matmul %203, %8, %cst_50 {dimension_numbers = #tpu.dot_dimension_numbers<[1], [0], [0], [1], [0, 0, 1, 1], [], []>} : vector<8x32xf32>, vector<32x128xf32>, vector<8x128xf32> -> vector<8x128xf32>
    %205 = arith.addf %204, %9 : vector<8x128xf32>
    %c24 = arith.constant 24 : index
    %c0_51 = arith.constant 0 : index
    %206 = vector.load %arg11[%c24, %c0_51] : memref<72x128xf32, #tpu.memory_space<vmem>>, vector<8x128xf32>
    tpu.vector_store %arg11[%c24, %c0_51], %205 {strides = array<i32>} : memref<72x128xf32, #tpu.memory_space<vmem>>, vector<8x128xf32>,
    %207 = vector.extract_strided_slice %16 {offsets = [32, 0], sizes = [8, 96], strides = [1, 1]} : vector<72x96xf32> to vector<8x96xf32>
    %208 = arith.addf %207, %2 : vector<8x96xf32>
    %cst_52 = arith.constant dense<0.000000e+00> : vector<8x96xf32>
    %209 = tpu.matmul %181, %4, %cst_52 {dimension_numbers = #tpu.dot_dimension_numbers<[1], [0], [0], [1], [0, 0, 1, 1], [], []>} : vector<8x32xf32>, vector<32x96xf32>, vector<8x96xf32> -> vector<8x96xf32>
    %210 = arith.addf %209, %6 : vector<8x96xf32>
    %211 = vector.extract_strided_slice %208 {offsets = [0, 0], sizes = [8, 64], strides = [1, 1]} : vector<8x96xf32> to vector<8x64xf32>
    %212 = vector.extract_strided_slice %210 {offsets = [0, 0], sizes = [8, 64], strides = [1, 1]} : vector<8x96xf32> to vector<8x64xf32>
    %213 = arith.addf %211, %212 : vector<8x64xf32>
    %214 = arith.negf %213 : vector<8x64xf32>
    %215 = math.exp %214 : vector<8x64xf32>
    %cst_53 = arith.constant 1.000000e+00 : f32
    %216 = vector.broadcast %cst_53 : f32 to vector<8x64xf32>
    %217 = arith.addf %216, %215 : vector<8x64xf32>
    %218 = arith.divf %216, %217 : vector<8x64xf32>
    %219 = vector.extract_strided_slice %218 {offsets = [0, 0], sizes = [8, 32], strides = [1, 1]} : vector<8x64xf32> to vector<8x32xf32>
    %220 = vector.extract_strided_slice %218 {offsets = [0, 32], sizes = [8, 32], strides = [1, 1]} : vector<8x64xf32> to vector<8x32xf32>
    %221 = vector.extract_strided_slice %208 {offsets = [0, 64], sizes = [8, 32], strides = [1, 1]} : vector<8x96xf32> to vector<8x32xf32>
    %222 = vector.extract_strided_slice %210 {offsets = [0, 64], sizes = [8, 32], strides = [1, 1]} : vector<8x96xf32> to vector<8x32xf32>
    %223 = arith.mulf %219, %222 : vector<8x32xf32>
    %224 = arith.addf %221, %223 : vector<8x32xf32>
    %225 = math.tanh %224 : vector<8x32xf32>
    %226 = arith.subf %181, %225 : vector<8x32xf32>
    %227 = arith.mulf %220, %226 : vector<8x32xf32>
    %228 = arith.addf %225, %227 : vector<8x32xf32>
    %cst_54 = arith.constant dense<0.000000e+00> : vector<8x96xf32>
    %229 = tpu.matmul %228, %1, %cst_54 {dimension_numbers = #tpu.dot_dimension_numbers<[1], [0], [0], [1], [0, 0, 1, 1], [], []>} : vector<8x32xf32>, vector<32x96xf32>, vector<8x96xf32> -> vector<8x96xf32>
    %230 = arith.addf %229, %3 : vector<8x96xf32>
    %cst_55 = arith.constant dense<0.000000e+00> : vector<8x96xf32>
    %231 = tpu.matmul %203, %5, %cst_55 {dimension_numbers = #tpu.dot_dimension_numbers<[1], [0], [0], [1], [0, 0, 1, 1], [], []>} : vector<8x32xf32>, vector<32x96xf32>, vector<8x96xf32> -> vector<8x96xf32>
    %232 = arith.addf %231, %7 : vector<8x96xf32>
    %233 = vector.extract_strided_slice %230 {offsets = [0, 0], sizes = [8, 64], strides = [1, 1]} : vector<8x96xf32> to vector<8x64xf32>
    %234 = vector.extract_strided_slice %232 {offsets = [0, 0], sizes = [8, 64], strides = [1, 1]} : vector<8x96xf32> to vector<8x64xf32>
    %235 = arith.addf %233, %234 : vector<8x64xf32>
    %236 = arith.negf %235 : vector<8x64xf32>
    %237 = math.exp %236 : vector<8x64xf32>
    %cst_56 = arith.constant 1.000000e+00 : f32
    %238 = vector.broadcast %cst_56 : f32 to vector<8x64xf32>
    %239 = arith.addf %238, %237 : vector<8x64xf32>
    %240 = arith.divf %238, %239 : vector<8x64xf32>
    %241 = vector.extract_strided_slice %240 {offsets = [0, 0], sizes = [8, 32], strides = [1, 1]} : vector<8x64xf32> to vector<8x32xf32>
    %242 = vector.extract_strided_slice %240 {offsets = [0, 32], sizes = [8, 32], strides = [1, 1]} : vector<8x64xf32> to vector<8x32xf32>
    %243 = vector.extract_strided_slice %230 {offsets = [0, 64], sizes = [8, 32], strides = [1, 1]} : vector<8x96xf32> to vector<8x32xf32>
    %244 = vector.extract_strided_slice %232 {offsets = [0, 64], sizes = [8, 32], strides = [1, 1]} : vector<8x96xf32> to vector<8x32xf32>
    %245 = arith.mulf %241, %244 : vector<8x32xf32>
    %246 = arith.addf %243, %245 : vector<8x32xf32>
    %247 = math.tanh %246 : vector<8x32xf32>
    %248 = arith.subf %203, %247 : vector<8x32xf32>
    %249 = arith.mulf %242, %248 : vector<8x32xf32>
    %250 = arith.addf %247, %249 : vector<8x32xf32>
    %cst_57 = arith.constant dense<0.000000e+00> : vector<8x128xf32>
    %251 = tpu.matmul %250, %8, %cst_57 {dimension_numbers = #tpu.dot_dimension_numbers<[1], [0], [0], [1], [0, 0, 1, 1], [], []>} : vector<8x32xf32>, vector<32x128xf32>, vector<8x128xf32> -> vector<8x128xf32>
    %252 = arith.addf %251, %9 : vector<8x128xf32>
    %c32 = arith.constant 32 : index
    %c0_58 = arith.constant 0 : index
    %253 = vector.load %arg11[%c32, %c0_58] : memref<72x128xf32, #tpu.memory_space<vmem>>, vector<8x128xf32>
    tpu.vector_store %arg11[%c32, %c0_58], %252 {strides = array<i32>} : memref<72x128xf32, #tpu.memory_space<vmem>>, vector<8x128xf32>,
    %254 = vector.extract_strided_slice %16 {offsets = [40, 0], sizes = [8, 96], strides = [1, 1]} : vector<72x96xf32> to vector<8x96xf32>
    %255 = arith.addf %254, %2 : vector<8x96xf32>
    %cst_59 = arith.constant dense<0.000000e+00> : vector<8x96xf32>
    %256 = tpu.matmul %228, %4, %cst_59 {dimension_numbers = #tpu.dot_dimension_numbers<[1], [0], [0], [1], [0, 0, 1, 1], [], []>} : vector<8x32xf32>, vector<32x96xf32>, vector<8x96xf32> -> vector<8x96xf32>
    %257 = arith.addf %256, %6 : vector<8x96xf32>
    %258 = vector.extract_strided_slice %255 {offsets = [0, 0], sizes = [8, 64], strides = [1, 1]} : vector<8x96xf32> to vector<8x64xf32>
    %259 = vector.extract_strided_slice %257 {offsets = [0, 0], sizes = [8, 64], strides = [1, 1]} : vector<8x96xf32> to vector<8x64xf32>
    %260 = arith.addf %258, %259 : vector<8x64xf32>
    %261 = arith.negf %260 : vector<8x64xf32>
    %262 = math.exp %261 : vector<8x64xf32>
    %cst_60 = arith.constant 1.000000e+00 : f32
    %263 = vector.broadcast %cst_60 : f32 to vector<8x64xf32>
    %264 = arith.addf %263, %262 : vector<8x64xf32>
    %265 = arith.divf %263, %264 : vector<8x64xf32>
    %266 = vector.extract_strided_slice %265 {offsets = [0, 0], sizes = [8, 32], strides = [1, 1]} : vector<8x64xf32> to vector<8x32xf32>
    %267 = vector.extract_strided_slice %265 {offsets = [0, 32], sizes = [8, 32], strides = [1, 1]} : vector<8x64xf32> to vector<8x32xf32>
    %268 = vector.extract_strided_slice %255 {offsets = [0, 64], sizes = [8, 32], strides = [1, 1]} : vector<8x96xf32> to vector<8x32xf32>
    %269 = vector.extract_strided_slice %257 {offsets = [0, 64], sizes = [8, 32], strides = [1, 1]} : vector<8x96xf32> to vector<8x32xf32>
    %270 = arith.mulf %266, %269 : vector<8x32xf32>
    %271 = arith.addf %268, %270 : vector<8x32xf32>
    %272 = math.tanh %271 : vector<8x32xf32>
    %273 = arith.subf %228, %272 : vector<8x32xf32>
    %274 = arith.mulf %267, %273 : vector<8x32xf32>
    %275 = arith.addf %272, %274 : vector<8x32xf32>
    %cst_61 = arith.constant dense<0.000000e+00> : vector<8x96xf32>
    %276 = tpu.matmul %275, %1, %cst_61 {dimension_numbers = #tpu.dot_dimension_numbers<[1], [0], [0], [1], [0, 0, 1, 1], [], []>} : vector<8x32xf32>, vector<32x96xf32>, vector<8x96xf32> -> vector<8x96xf32>
    %277 = arith.addf %276, %3 : vector<8x96xf32>
    %cst_62 = arith.constant dense<0.000000e+00> : vector<8x96xf32>
    %278 = tpu.matmul %250, %5, %cst_62 {dimension_numbers = #tpu.dot_dimension_numbers<[1], [0], [0], [1], [0, 0, 1, 1], [], []>} : vector<8x32xf32>, vector<32x96xf32>, vector<8x96xf32> -> vector<8x96xf32>
    %279 = arith.addf %278, %7 : vector<8x96xf32>
    %280 = vector.extract_strided_slice %277 {offsets = [0, 0], sizes = [8, 64], strides = [1, 1]} : vector<8x96xf32> to vector<8x64xf32>
    %281 = vector.extract_strided_slice %279 {offsets = [0, 0], sizes = [8, 64], strides = [1, 1]} : vector<8x96xf32> to vector<8x64xf32>
    %282 = arith.addf %280, %281 : vector<8x64xf32>
    %283 = arith.negf %282 : vector<8x64xf32>
    %284 = math.exp %283 : vector<8x64xf32>
    %cst_63 = arith.constant 1.000000e+00 : f32
    %285 = vector.broadcast %cst_63 : f32 to vector<8x64xf32>
    %286 = arith.addf %285, %284 : vector<8x64xf32>
    %287 = arith.divf %285, %286 : vector<8x64xf32>
    %288 = vector.extract_strided_slice %287 {offsets = [0, 0], sizes = [8, 32], strides = [1, 1]} : vector<8x64xf32> to vector<8x32xf32>
    %289 = vector.extract_strided_slice %287 {offsets = [0, 32], sizes = [8, 32], strides = [1, 1]} : vector<8x64xf32> to vector<8x32xf32>
    %290 = vector.extract_strided_slice %277 {offsets = [0, 64], sizes = [8, 32], strides = [1, 1]} : vector<8x96xf32> to vector<8x32xf32>
    %291 = vector.extract_strided_slice %279 {offsets = [0, 64], sizes = [8, 32], strides = [1, 1]} : vector<8x96xf32> to vector<8x32xf32>
    %292 = arith.mulf %288, %291 : vector<8x32xf32>
    %293 = arith.addf %290, %292 : vector<8x32xf32>
    %294 = math.tanh %293 : vector<8x32xf32>
    %295 = arith.subf %250, %294 : vector<8x32xf32>
    %296 = arith.mulf %289, %295 : vector<8x32xf32>
    %297 = arith.addf %294, %296 : vector<8x32xf32>
    %cst_64 = arith.constant dense<0.000000e+00> : vector<8x128xf32>
    %298 = tpu.matmul %297, %8, %cst_64 {dimension_numbers = #tpu.dot_dimension_numbers<[1], [0], [0], [1], [0, 0, 1, 1], [], []>} : vector<8x32xf32>, vector<32x128xf32>, vector<8x128xf32> -> vector<8x128xf32>
    %299 = arith.addf %298, %9 : vector<8x128xf32>
    %c40 = arith.constant 40 : index
    %c0_65 = arith.constant 0 : index
    %300 = vector.load %arg11[%c40, %c0_65] : memref<72x128xf32, #tpu.memory_space<vmem>>, vector<8x128xf32>
    tpu.vector_store %arg11[%c40, %c0_65], %299 {strides = array<i32>} : memref<72x128xf32, #tpu.memory_space<vmem>>, vector<8x128xf32>,
    %301 = vector.extract_strided_slice %16 {offsets = [48, 0], sizes = [8, 96], strides = [1, 1]} : vector<72x96xf32> to vector<8x96xf32>
    %302 = arith.addf %301, %2 : vector<8x96xf32>
    %cst_66 = arith.constant dense<0.000000e+00> : vector<8x96xf32>
    %303 = tpu.matmul %275, %4, %cst_66 {dimension_numbers = #tpu.dot_dimension_numbers<[1], [0], [0], [1], [0, 0, 1, 1], [], []>} : vector<8x32xf32>, vector<32x96xf32>, vector<8x96xf32> -> vector<8x96xf32>
    %304 = arith.addf %303, %6 : vector<8x96xf32>
    %305 = vector.extract_strided_slice %302 {offsets = [0, 0], sizes = [8, 64], strides = [1, 1]} : vector<8x96xf32> to vector<8x64xf32>
    %306 = vector.extract_strided_slice %304 {offsets = [0, 0], sizes = [8, 64], strides = [1, 1]} : vector<8x96xf32> to vector<8x64xf32>
    %307 = arith.addf %305, %306 : vector<8x64xf32>
    %308 = arith.negf %307 : vector<8x64xf32>
    %309 = math.exp %308 : vector<8x64xf32>
    %cst_67 = arith.constant 1.000000e+00 : f32
    %310 = vector.broadcast %cst_67 : f32 to vector<8x64xf32>
    %311 = arith.addf %310, %309 : vector<8x64xf32>
    %312 = arith.divf %310, %311 : vector<8x64xf32>
    %313 = vector.extract_strided_slice %312 {offsets = [0, 0], sizes = [8, 32], strides = [1, 1]} : vector<8x64xf32> to vector<8x32xf32>
    %314 = vector.extract_strided_slice %312 {offsets = [0, 32], sizes = [8, 32], strides = [1, 1]} : vector<8x64xf32> to vector<8x32xf32>
    %315 = vector.extract_strided_slice %302 {offsets = [0, 64], sizes = [8, 32], strides = [1, 1]} : vector<8x96xf32> to vector<8x32xf32>
    %316 = vector.extract_strided_slice %304 {offsets = [0, 64], sizes = [8, 32], strides = [1, 1]} : vector<8x96xf32> to vector<8x32xf32>
    %317 = arith.mulf %313, %316 : vector<8x32xf32>
    %318 = arith.addf %315, %317 : vector<8x32xf32>
    %319 = math.tanh %318 : vector<8x32xf32>
    %320 = arith.subf %275, %319 : vector<8x32xf32>
    %321 = arith.mulf %314, %320 : vector<8x32xf32>
    %322 = arith.addf %319, %321 : vector<8x32xf32>
    %cst_68 = arith.constant dense<0.000000e+00> : vector<8x96xf32>
    %323 = tpu.matmul %322, %1, %cst_68 {dimension_numbers = #tpu.dot_dimension_numbers<[1], [0], [0], [1], [0, 0, 1, 1], [], []>} : vector<8x32xf32>, vector<32x96xf32>, vector<8x96xf32> -> vector<8x96xf32>
    %324 = arith.addf %323, %3 : vector<8x96xf32>
    %cst_69 = arith.constant dense<0.000000e+00> : vector<8x96xf32>
    %325 = tpu.matmul %297, %5, %cst_69 {dimension_numbers = #tpu.dot_dimension_numbers<[1], [0], [0], [1], [0, 0, 1, 1], [], []>} : vector<8x32xf32>, vector<32x96xf32>, vector<8x96xf32> -> vector<8x96xf32>
    %326 = arith.addf %325, %7 : vector<8x96xf32>
    %327 = vector.extract_strided_slice %324 {offsets = [0, 0], sizes = [8, 64], strides = [1, 1]} : vector<8x96xf32> to vector<8x64xf32>
    %328 = vector.extract_strided_slice %326 {offsets = [0, 0], sizes = [8, 64], strides = [1, 1]} : vector<8x96xf32> to vector<8x64xf32>
    %329 = arith.addf %327, %328 : vector<8x64xf32>
    %330 = arith.negf %329 : vector<8x64xf32>
    %331 = math.exp %330 : vector<8x64xf32>
    %cst_70 = arith.constant 1.000000e+00 : f32
    %332 = vector.broadcast %cst_70 : f32 to vector<8x64xf32>
    %333 = arith.addf %332, %331 : vector<8x64xf32>
    %334 = arith.divf %332, %333 : vector<8x64xf32>
    %335 = vector.extract_strided_slice %334 {offsets = [0, 0], sizes = [8, 32], strides = [1, 1]} : vector<8x64xf32> to vector<8x32xf32>
    %336 = vector.extract_strided_slice %334 {offsets = [0, 32], sizes = [8, 32], strides = [1, 1]} : vector<8x64xf32> to vector<8x32xf32>
    %337 = vector.extract_strided_slice %324 {offsets = [0, 64], sizes = [8, 32], strides = [1, 1]} : vector<8x96xf32> to vector<8x32xf32>
    %338 = vector.extract_strided_slice %326 {offsets = [0, 64], sizes = [8, 32], strides = [1, 1]} : vector<8x96xf32> to vector<8x32xf32>
    %339 = arith.mulf %335, %338 : vector<8x32xf32>
    %340 = arith.addf %337, %339 : vector<8x32xf32>
    %341 = math.tanh %340 : vector<8x32xf32>
    %342 = arith.subf %297, %341 : vector<8x32xf32>
    %343 = arith.mulf %336, %342 : vector<8x32xf32>
    %344 = arith.addf %341, %343 : vector<8x32xf32>
    %cst_71 = arith.constant dense<0.000000e+00> : vector<8x128xf32>
    %345 = tpu.matmul %344, %8, %cst_71 {dimension_numbers = #tpu.dot_dimension_numbers<[1], [0], [0], [1], [0, 0, 1, 1], [], []>} : vector<8x32xf32>, vector<32x128xf32>, vector<8x128xf32> -> vector<8x128xf32>
    %346 = arith.addf %345, %9 : vector<8x128xf32>
    %c48 = arith.constant 48 : index
    %c0_72 = arith.constant 0 : index
    %347 = vector.load %arg11[%c48, %c0_72] : memref<72x128xf32, #tpu.memory_space<vmem>>, vector<8x128xf32>
    tpu.vector_store %arg11[%c48, %c0_72], %346 {strides = array<i32>} : memref<72x128xf32, #tpu.memory_space<vmem>>, vector<8x128xf32>,
    %348 = vector.extract_strided_slice %16 {offsets = [56, 0], sizes = [8, 96], strides = [1, 1]} : vector<72x96xf32> to vector<8x96xf32>
    %349 = arith.addf %348, %2 : vector<8x96xf32>
    %cst_73 = arith.constant dense<0.000000e+00> : vector<8x96xf32>
    %350 = tpu.matmul %322, %4, %cst_73 {dimension_numbers = #tpu.dot_dimension_numbers<[1], [0], [0], [1], [0, 0, 1, 1], [], []>} : vector<8x32xf32>, vector<32x96xf32>, vector<8x96xf32> -> vector<8x96xf32>
    %351 = arith.addf %350, %6 : vector<8x96xf32>
    %352 = vector.extract_strided_slice %349 {offsets = [0, 0], sizes = [8, 64], strides = [1, 1]} : vector<8x96xf32> to vector<8x64xf32>
    %353 = vector.extract_strided_slice %351 {offsets = [0, 0], sizes = [8, 64], strides = [1, 1]} : vector<8x96xf32> to vector<8x64xf32>
    %354 = arith.addf %352, %353 : vector<8x64xf32>
    %355 = arith.negf %354 : vector<8x64xf32>
    %356 = math.exp %355 : vector<8x64xf32>
    %cst_74 = arith.constant 1.000000e+00 : f32
    %357 = vector.broadcast %cst_74 : f32 to vector<8x64xf32>
    %358 = arith.addf %357, %356 : vector<8x64xf32>
    %359 = arith.divf %357, %358 : vector<8x64xf32>
    %360 = vector.extract_strided_slice %359 {offsets = [0, 0], sizes = [8, 32], strides = [1, 1]} : vector<8x64xf32> to vector<8x32xf32>
    %361 = vector.extract_strided_slice %359 {offsets = [0, 32], sizes = [8, 32], strides = [1, 1]} : vector<8x64xf32> to vector<8x32xf32>
    %362 = vector.extract_strided_slice %349 {offsets = [0, 64], sizes = [8, 32], strides = [1, 1]} : vector<8x96xf32> to vector<8x32xf32>
    %363 = vector.extract_strided_slice %351 {offsets = [0, 64], sizes = [8, 32], strides = [1, 1]} : vector<8x96xf32> to vector<8x32xf32>
    %364 = arith.mulf %360, %363 : vector<8x32xf32>
    %365 = arith.addf %362, %364 : vector<8x32xf32>
    %366 = math.tanh %365 : vector<8x32xf32>
    %367 = arith.subf %322, %366 : vector<8x32xf32>
    %368 = arith.mulf %361, %367 : vector<8x32xf32>
    %369 = arith.addf %366, %368 : vector<8x32xf32>
    %cst_75 = arith.constant dense<0.000000e+00> : vector<8x96xf32>
    %370 = tpu.matmul %369, %1, %cst_75 {dimension_numbers = #tpu.dot_dimension_numbers<[1], [0], [0], [1], [0, 0, 1, 1], [], []>} : vector<8x32xf32>, vector<32x96xf32>, vector<8x96xf32> -> vector<8x96xf32>
    %371 = arith.addf %370, %3 : vector<8x96xf32>
    %cst_76 = arith.constant dense<0.000000e+00> : vector<8x96xf32>
    %372 = tpu.matmul %344, %5, %cst_76 {dimension_numbers = #tpu.dot_dimension_numbers<[1], [0], [0], [1], [0, 0, 1, 1], [], []>} : vector<8x32xf32>, vector<32x96xf32>, vector<8x96xf32> -> vector<8x96xf32>
    %373 = arith.addf %372, %7 : vector<8x96xf32>
    %374 = vector.extract_strided_slice %371 {offsets = [0, 0], sizes = [8, 64], strides = [1, 1]} : vector<8x96xf32> to vector<8x64xf32>
    %375 = vector.extract_strided_slice %373 {offsets = [0, 0], sizes = [8, 64], strides = [1, 1]} : vector<8x96xf32> to vector<8x64xf32>
    %376 = arith.addf %374, %375 : vector<8x64xf32>
    %377 = arith.negf %376 : vector<8x64xf32>
    %378 = math.exp %377 : vector<8x64xf32>
    %cst_77 = arith.constant 1.000000e+00 : f32
    %379 = vector.broadcast %cst_77 : f32 to vector<8x64xf32>
    %380 = arith.addf %379, %378 : vector<8x64xf32>
    %381 = arith.divf %379, %380 : vector<8x64xf32>
    %382 = vector.extract_strided_slice %381 {offsets = [0, 0], sizes = [8, 32], strides = [1, 1]} : vector<8x64xf32> to vector<8x32xf32>
    %383 = vector.extract_strided_slice %381 {offsets = [0, 32], sizes = [8, 32], strides = [1, 1]} : vector<8x64xf32> to vector<8x32xf32>
    %384 = vector.extract_strided_slice %371 {offsets = [0, 64], sizes = [8, 32], strides = [1, 1]} : vector<8x96xf32> to vector<8x32xf32>
    %385 = vector.extract_strided_slice %373 {offsets = [0, 64], sizes = [8, 32], strides = [1, 1]} : vector<8x96xf32> to vector<8x32xf32>
    %386 = arith.mulf %382, %385 : vector<8x32xf32>
    %387 = arith.addf %384, %386 : vector<8x32xf32>
    %388 = math.tanh %387 : vector<8x32xf32>
    %389 = arith.subf %344, %388 : vector<8x32xf32>
    %390 = arith.mulf %383, %389 : vector<8x32xf32>
    %391 = arith.addf %388, %390 : vector<8x32xf32>
    %cst_78 = arith.constant dense<0.000000e+00> : vector<8x128xf32>
    %392 = tpu.matmul %391, %8, %cst_78 {dimension_numbers = #tpu.dot_dimension_numbers<[1], [0], [0], [1], [0, 0, 1, 1], [], []>} : vector<8x32xf32>, vector<32x128xf32>, vector<8x128xf32> -> vector<8x128xf32>
    %393 = arith.addf %392, %9 : vector<8x128xf32>
    %c56 = arith.constant 56 : index
    %c0_79 = arith.constant 0 : index
    %394 = vector.load %arg11[%c56, %c0_79] : memref<72x128xf32, #tpu.memory_space<vmem>>, vector<8x128xf32>
    tpu.vector_store %arg11[%c56, %c0_79], %393 {strides = array<i32>} : memref<72x128xf32, #tpu.memory_space<vmem>>, vector<8x128xf32>,
    %395 = vector.extract_strided_slice %16 {offsets = [64, 0], sizes = [8, 96], strides = [1, 1]} : vector<72x96xf32> to vector<8x96xf32>
    %396 = arith.addf %395, %2 : vector<8x96xf32>
    %cst_80 = arith.constant dense<0.000000e+00> : vector<8x96xf32>
    %397 = tpu.matmul %369, %4, %cst_80 {dimension_numbers = #tpu.dot_dimension_numbers<[1], [0], [0], [1], [0, 0, 1, 1], [], []>} : vector<8x32xf32>, vector<32x96xf32>, vector<8x96xf32> -> vector<8x96xf32>
    %398 = arith.addf %397, %6 : vector<8x96xf32>
    %399 = vector.extract_strided_slice %396 {offsets = [0, 0], sizes = [8, 64], strides = [1, 1]} : vector<8x96xf32> to vector<8x64xf32>
    %400 = vector.extract_strided_slice %398 {offsets = [0, 0], sizes = [8, 64], strides = [1, 1]} : vector<8x96xf32> to vector<8x64xf32>
    %401 = arith.addf %399, %400 : vector<8x64xf32>
    %402 = arith.negf %401 : vector<8x64xf32>
    %403 = math.exp %402 : vector<8x64xf32>
    %cst_81 = arith.constant 1.000000e+00 : f32
    %404 = vector.broadcast %cst_81 : f32 to vector<8x64xf32>
    %405 = arith.addf %404, %403 : vector<8x64xf32>
    %406 = arith.divf %404, %405 : vector<8x64xf32>
    %407 = vector.extract_strided_slice %406 {offsets = [0, 0], sizes = [8, 32], strides = [1, 1]} : vector<8x64xf32> to vector<8x32xf32>
    %408 = vector.extract_strided_slice %406 {offsets = [0, 32], sizes = [8, 32], strides = [1, 1]} : vector<8x64xf32> to vector<8x32xf32>
    %409 = vector.extract_strided_slice %396 {offsets = [0, 64], sizes = [8, 32], strides = [1, 1]} : vector<8x96xf32> to vector<8x32xf32>
    %410 = vector.extract_strided_slice %398 {offsets = [0, 64], sizes = [8, 32], strides = [1, 1]} : vector<8x96xf32> to vector<8x32xf32>
    %411 = arith.mulf %407, %410 : vector<8x32xf32>
    %412 = arith.addf %409, %411 : vector<8x32xf32>
    %413 = math.tanh %412 : vector<8x32xf32>
    %414 = arith.subf %369, %413 : vector<8x32xf32>
    %415 = arith.mulf %408, %414 : vector<8x32xf32>
    %416 = arith.addf %413, %415 : vector<8x32xf32>
    %cst_82 = arith.constant dense<0.000000e+00> : vector<8x96xf32>
    %417 = tpu.matmul %416, %1, %cst_82 {dimension_numbers = #tpu.dot_dimension_numbers<[1], [0], [0], [1], [0, 0, 1, 1], [], []>} : vector<8x32xf32>, vector<32x96xf32>, vector<8x96xf32> -> vector<8x96xf32>
    %418 = arith.addf %417, %3 : vector<8x96xf32>
    %cst_83 = arith.constant dense<0.000000e+00> : vector<8x96xf32>
    %419 = tpu.matmul %391, %5, %cst_83 {dimension_numbers = #tpu.dot_dimension_numbers<[1], [0], [0], [1], [0, 0, 1, 1], [], []>} : vector<8x32xf32>, vector<32x96xf32>, vector<8x96xf32> -> vector<8x96xf32>
    %420 = arith.addf %419, %7 : vector<8x96xf32>
    %421 = vector.extract_strided_slice %418 {offsets = [0, 0], sizes = [8, 64], strides = [1, 1]} : vector<8x96xf32> to vector<8x64xf32>
    %422 = vector.extract_strided_slice %420 {offsets = [0, 0], sizes = [8, 64], strides = [1, 1]} : vector<8x96xf32> to vector<8x64xf32>
    %423 = arith.addf %421, %422 : vector<8x64xf32>
    %424 = arith.negf %423 : vector<8x64xf32>
    %425 = math.exp %424 : vector<8x64xf32>
    %cst_84 = arith.constant 1.000000e+00 : f32
    %426 = vector.broadcast %cst_84 : f32 to vector<8x64xf32>
    %427 = arith.addf %426, %425 : vector<8x64xf32>
    %428 = arith.divf %426, %427 : vector<8x64xf32>
    %429 = vector.extract_strided_slice %428 {offsets = [0, 0], sizes = [8, 32], strides = [1, 1]} : vector<8x64xf32> to vector<8x32xf32>
    %430 = vector.extract_strided_slice %428 {offsets = [0, 32], sizes = [8, 32], strides = [1, 1]} : vector<8x64xf32> to vector<8x32xf32>
    %431 = vector.extract_strided_slice %418 {offsets = [0, 64], sizes = [8, 32], strides = [1, 1]} : vector<8x96xf32> to vector<8x32xf32>
    %432 = vector.extract_strided_slice %420 {offsets = [0, 64], sizes = [8, 32], strides = [1, 1]} : vector<8x96xf32> to vector<8x32xf32>
    %433 = arith.mulf %429, %432 : vector<8x32xf32>
    %434 = arith.addf %431, %433 : vector<8x32xf32>
    %435 = math.tanh %434 : vector<8x32xf32>
    %436 = arith.subf %391, %435 : vector<8x32xf32>
    %437 = arith.mulf %430, %436 : vector<8x32xf32>
    %438 = arith.addf %435, %437 : vector<8x32xf32>
    %cst_85 = arith.constant dense<0.000000e+00> : vector<8x128xf32>
    %439 = tpu.matmul %438, %8, %cst_85 {dimension_numbers = #tpu.dot_dimension_numbers<[1], [0], [0], [1], [0, 0, 1, 1], [], []>} : vector<8x32xf32>, vector<32x128xf32>, vector<8x128xf32> -> vector<8x128xf32>
    %440 = arith.addf %439, %9 : vector<8x128xf32>
    %c64 = arith.constant 64 : index
    %c0_86 = arith.constant 0 : index
    %441 = vector.load %arg11[%c64, %c0_86] : memref<72x128xf32, #tpu.memory_space<vmem>>, vector<8x128xf32>
    tpu.vector_store %arg11[%c64, %c0_86], %440 {strides = array<i32>} : memref<72x128xf32, #tpu.memory_space<vmem>>, vector<8x128xf32>,
    return
  }
}

</mosaic_0001>

<bundles_post_ra>
// kernel: squeeze.1
= control target key start
LH: loop header
LB: loop body
LE: loop exit
PB: predicated region body
PF: predicated region fallthrough
CT: control target
= control target key end

     0   :  { %s74_s8 = smov 120   ;;  %vm7_vm0 = vcmask 64512   ;;  %s75_s11 = smov 96   ;;  %s130_s0 = inlined_call_operand.vmem [shape: f32[72], index: 0, kind: input, shape index: {}]   ;;  %s131_s1 = inlined_call_operand.vmem [shape: f32[9,8], index: 1, kind: output, shape index: {}]  }
   0x1   :  { %v4_v0 = vld [vmem:[%s130_s0] sm:$0x1]  ;;  %s73_s0 = smov 104   ;;  %s76_s12 = smov 112  }
   0x2   :  { %5 = vst [vmem:[#allocation0] sm:$0x1] %v4_v0  ;;  %s77_s13 = smov 80   ;;  %s78_s14 = smov 88  }
   0x3   :  { %s79_s15 = smov 64   ;;  %s80_s16 = smov 72  }
   0x9   :  { %v21_v1 = vld [vmem:[#allocation0] sm:$0x1]  }
   0xa   :  { %v9_v2 = vld [vmem:[#allocation0] sm:$0x1]   ;;  %22 = vrot.lane.b32.xlu1 %v21_v1, %s73_s0 }
   0xb   :  { %10 = vrot.lane.b32.xlu0 %v9_v2, %s74_s8  ;;  %v27_v3 = vld [vmem:[#allocation0] sm:$0x1]  }
   0xc   :  { %v15_v4 = vld [vmem:[#allocation0] sm:$0x1]  }
   0xd   :  { %v6_v5 = vld [vmem:[#allocation0] sm:$0x1]  }
   0xe   :  { %8 = vst.msk [vmem:[%s131_s1] sm:$0x1] %vm7_vm0, %v6_v5   ;;  %28 = vrot.lane.b32.xlu1 %v27_v3, %s75_s11  ;;  %v39_v6 = vld [vmem:[#allocation0] sm:$0x1]  }
   0xf   :  { %16 = vrot.lane.b32.xlu0 %v15_v4, %s76_s12  ;;  %v33_v7 = vld [vmem:[#allocation0] sm:$0x1]  }
  0x10   :  { %v51_v8 = vld [vmem:[#allocation0] sm:$0x1]  }
  0x11   :  { %v45_v9 = vld [vmem:[#allocation0] sm:$0x1]  }
  0x12   :  { %40 = vrot.lane.b32.xlu1 %v39_v6, %s77_s13 }
  0x13   :  { %34 = vrot.lane.b32.xlu0 %v33_v7, %s78_s14 }
  0x16   :  { %52 = vrot.lane.b32.xlu1 %v51_v8, %s79_s15 }
  0x17   :  { %46 = vrot.lane.b32.xlu0 %v45_v9, %s80_s16 }
  0x7c   :  { %v23_v10 = vpop.permute.xlu1 %22  }
  0x7d   :  { %v11_v11 = vpop.permute.xlu0 %10   ;;  %59 = vst.msk [vmem:[%s131_s1 + $0x3] sm:$0x1] %vm7_vm0, %v23_v10  }
  0x7e   :  { %57 = vst.msk [vmem:[%s131_s1 + $0x1] sm:$0x1] %vm7_vm0, %v11_v11  }
  0x80   :  { %v29_v12 = vpop.permute.xlu1 %28  }
  0x81   :  { %v17_v13 = vpop.permute.xlu0 %16   ;;  %60 = vst.msk [vmem:[%s131_s1 + $0x4] sm:$0x1] %vm7_vm0, %v29_v12  }
  0x82   :  { %58 = vst.msk [vmem:[%s131_s1 + $0x2] sm:$0x1] %vm7_vm0, %v17_v13  }
  0x84   :  { %v41_v14 = vpop.permute.xlu1 %40  }
  0x85   :  { %v35_v15 = vpop.permute.xlu0 %34   ;;  %62 = vst.msk [vmem:[%s131_s1 + $0x6] sm:$0x1] %vm7_vm0, %v41_v14  }
  0x86   :  { %61 = vst.msk [vmem:[%s131_s1 + $0x5] sm:$0x1] %vm7_vm0, %v35_v15  }
  0x88   :  { %v53_v16 = vpop.permute.xlu1 %52  }
  0x89   :  { %v47_v17 = vpop.permute.xlu0 %46   ;;  %64 = vst.msk [vmem:[%s131_s1 + $0x8] sm:$0x1] %vm7_vm0, %v53_v16  }
  0x8a   :  { %63 = vst.msk [vmem:[%s131_s1 + $0x7] sm:$0x1] %vm7_vm0, %v47_v17  }

// kernel: critic_forward.1
= control target key start
LH: loop header
LB: loop body
LE: loop exit
PB: predicated region body
PF: predicated region fallthrough
CT: control target
= control target key end

     0   :  { %16 = vsyncpa [#allocation3], 0  ;;  %s5408_s0 = inlined_call_operand.vmem [shape: s32[72,1], index: 0, kind: input, shape index: {}]   ;;  %s5409_s1 = inlined_call_operand.hbm [shape: f32[10,96], index: 1, kind: input, shape index: {}]   ;;  %s5410_s2 = inlined_call_operand.hbm [shape: f32[8,96], index: 2, kind: input, shape index: {}]   ;;  %s5411_s3 = inlined_call_operand.vmem [shape: f32[32,96], index: 3, kind: input, shape index: {}]   ;;  %s5412_s4 = inlined_call_operand.hbm [shape: f32[8,96], index: 4, kind: input, shape index: {}]   ;;  %s5413_s5 = inlined_call_operand.vmem [shape: f32[32,96], index: 5, kind: input, shape index: {}]   ;;  %s5414_s6 = inlined_call_operand.vmem [shape: f32[8,96], index: 6, kind: input, shape index: {}]   ;;  %s5415_s7 = inlined_call_operand.vmem [shape: f32[32,96], index: 7, kind: input, shape index: {}]   ;;  %s5416_s8 = inlined_call_operand.hbm [shape: f32[8,96], index: 8, kind: input, shape index: {}]   ;;  %s5417_s9 = inlined_call_operand.vmem [shape: f32[32,128], index: 9, kind: input, shape index: {}]   ;;  %s5418_s10 = inlined_call_operand.vmem [shape: f32[8,128], index: 10, kind: input, shape index: {}]   ;;  %s5419_s11 = inlined_call_operand.vmem [shape: f32[72,128], index: 11, kind: output, shape index: {}]  }
   0x1   :  { %17 = vsyncpa [#allocation5], 0 }
   0x2   :  { %18 = vsyncpa [#allocation8], 0  ;;  %s4610_s17 = smov [#allocation4]   ;;  %s4611_s19 = smov [#allocation2]  }
   0x3   :  { %s39_s18 = sshll.u32 %s4610_s17, 4  ;;  %s26_s20 = sshll.u32 %s4611_s19, 4  ;;  %s40_s18 = int_to_ptr.vmem [resolvable:$true] %s39_s18  ;;  %s4684_s20 = int_to_ptr.vmem [resolvable:$true] %s26_s20 }
   0x4   :  { %s4516_s23 = scalar_lea.hbm %s5410_s2, 128 }
   0x5   :  { %p4517_p0 = scmp.ne.s32.totalorder %s5410_s2, %s4516_s23  ;;  %p4520_p1 = scmp.lt.u32.totalorder %s4516_s23, %s5410_s2 }
   0x7   :  { %p4522_p2 = pnand %p4520_p1, %p4517_p0 }
   0x9   :  { %4525 = shalt.err (!%p4522_p2)
}
   0xa   :  { %s4526_s28 = scalar_lea.vmem %s40_s18, 128  ;;  %p4531_p4 = scmp.lt.s32.totalorder %s40_s18, %s40_s18 }
   0xb   :  { %p4527_p3 = scmp.ne.s32.totalorder %s40_s18, %s4526_s28  ;;  %p4532_p5 = scmp.lt.s32.totalorder %s4526_s28, %s4526_s28 }
   0xd   :  { %p4533_p6 = por %p4532_p5, %p4531_p4 }
   0xf   :  { %p4534_p7 = pnand %p4533_p6, %p4527_p3 }
  0x11   :  { %4537 = shalt.err (!%p4534_p7)
}
  0x12   :  { %42 = dma.hbm_to_vmem [thread:$0]  %s5410_s2, 128, %s40_s18, [#allocation5]  }
  0x13   :  { %s4538_s14 = scalar_lea.hbm %s5409_s1, 256 }
  0x14   :  { %p4539_p8 = scmp.ne.s32.totalorder %s5409_s1, %s4538_s14  ;;  %p4542_p9 = scmp.lt.u32.totalorder %s4538_s14, %s5409_s1 }
  0x16   :  { %p4544_p10 = pnand %p4542_p9, %p4539_p8 }
  0x18   :  { %4547 = shalt.err (!%p4544_p10)
}
  0x19   :  { %s4548_s21 = scalar_lea.vmem %s4684_s20, 256  ;;  %p4553_p12 = scmp.lt.s32.totalorder %s4684_s20, %s4684_s20 }
  0x1a   :  { %p4549_p11 = scmp.ne.s32.totalorder %s4684_s20, %s4548_s21  ;;  %p4554_p13 = scmp.lt.s32.totalorder %s4548_s21, %s4548_s21 }
  0x1c   :  { %p4555_p0 = por %p4554_p13, %p4553_p12 }
  0x1e   :  { %p4556_p1 = pnand %p4555_p0, %p4549_p11 }
  0x20   :  { %4559 = shalt.err (!%p4556_p1)
}
  0x21   :  { %s4612_s2 = smov 128   ;;  %s4613_s18 = smov 8  }
  0x22   :  { %32 = dma.hbm_to_vmem [thread:$0]  %s5409_s1, 256, %s4684_s20, [#allocation3], %s4612_s2, %s4612_s2, %s4613_s18  }
  0x23   :  { %s4614_s24 = smov [#allocation6]   ;;  %s4615_s26 = smov [#allocation7]  }
  0x24   :  { %s51_s25 = sshll.u32 %s4614_s24, 4  ;;  %s67_s27 = sshll.u32 %s4615_s26, 4  ;;  %s52_s25 = int_to_ptr.vmem [resolvable:$true] %s51_s25  ;;  %s68_s27 = int_to_ptr.vmem [resolvable:$true] %s67_s27 }
  0x25   :  { %s4560_s30 = scalar_lea.hbm %s5412_s4, 128 }
  0x26   :  { %p4561_p2 = scmp.ne.s32.totalorder %s5412_s4, %s4560_s30  ;;  %p4564_p3 = scmp.lt.u32.totalorder %s4560_s30, %s5412_s4 }
  0x28   :  { %p4566_p4 = pnand %p4564_p3, %p4561_p2 }
  0x2a   :  { %4569 = shalt.err (!%p4566_p4)
}
  0x2b   :  { %s4570_s1 = scalar_lea.vmem %s52_s25, 128  ;;  %p4575_p6 = scmp.lt.s32.totalorder %s52_s25, %s52_s25 }
  0x2c   :  { %p4571_p5 = scmp.ne.s32.totalorder %s52_s25, %s4570_s1  ;;  %p4576_p7 = scmp.lt.s32.totalorder %s4570_s1, %s4570_s1 }
  0x2e   :  { %p4577_p8 = por %p4576_p7, %p4575_p6 }
  0x30   :  { %p4578_p9 = pnand %p4577_p8, %p4571_p5 }
  0x32   :  { %4581 = shalt.err (!%p4578_p9)
}
  0x33   :  { %54 = dma.hbm_to_vmem [thread:$0]  %s5412_s4, 128, %s52_s25, [#allocation5]  }
  0x34   :  { %s4582_s21 = scalar_lea.hbm %s5416_s8, 128 }
  0x35   :  { %p4583_p10 = scmp.ne.s32.totalorder %s5416_s8, %s4582_s21  ;;  %p4586_p11 = scmp.lt.u32.totalorder %s4582_s21, %s5416_s8 }
  0x37   :  { %p4588_p12 = pnand %p4586_p11, %p4583_p10 }
  0x39   :  { %4591 = shalt.err (!%p4588_p12)
}
  0x3a   :  { %s4592_s24 = scalar_lea.vmem %s68_s27, 128  ;;  %p4597_p0 = scmp.lt.s32.totalorder %s68_s27, %s68_s27 }
  0x3b   :  { %p4593_p13 = scmp.ne.s32.totalorder %s68_s27, %s4592_s24  ;;  %p4598_p1 = scmp.lt.s32.totalorder %s4592_s24, %s4592_s24 }
  0x3d   :  { %p4599_p2 = por %p4598_p1, %p4597_p0 }
  0x3f   :  { %p4600_p3 = pnand %p4599_p2, %p4593_p13 }
  0x41   :  { %4603 = shalt.err (!%p4600_p3)
}
  0x42   :  { %70 = dma.hbm_to_vmem [thread:$0]  %s5416_s8, 128, %s68_s27, [#allocation8]  }
  0x43   :  { %4604 = dma.done.wait [#allocation3], 256  }
  0x44   :  { %4605 = vsyncadd [#allocation3], 4294967040 }
  0x45   :  { %4606 = dma.done.wait [#allocation5], 256  }
  0x46   :  { %4607 = vsyncadd [#allocation5], 4294967040 }
  0x47   :  { %4608 = dma.done.wait [#allocation8], 128  }
  0x48   :  { %4609 = vsyncadd [#allocation8], 4294967168  ;;  %v4616_v0 = vmov 0   ;;  %v4617_v1 = vmov 0.0|0.0   ;;  %vm4618_vm0 = vmmov 0   ;;  %v4619_v2 = vmov 0.0  }
  0x49   :  { %4401 = vset.pattern.permute.xlu0 %v4616_v0  ;;  %4171 = vmatprep.subr.bf16.mxu1 %v4617_v1  ;;  %vm203_vm1 = vcmask 1041408   ;;  %v110_v3 = vld [vmem:[%s5408_s0] sm:$0xff]  ;;  %v96_v5 = vld [vmem:[%s5411_s3 + $0x8] sm:$0xff]  ;;  %v97_v7 = vld [vmem:[%s5411_s3 + $0x10] sm:$0xff]  ;;  %vm4620_vm2 = vmmov 1   ;;  %v119_v13 = vlaneseq  ;;  %vm175_vm4 = vcmask 80896  }
  0x4a   :  { %3779 = vmatprep.mubr.msk.f32.mxu1 %vm4618_vm0, %v4619_v2  ;;  %4167 = vmatprep.subr.bf16.mxu0 %v4617_v1  ;;  %v95_v4 = vld [vmem:[%s5411_s3] sm:$0xff]  ;;  %v98_v8 = vld [vmem:[%s5411_s3 + $0x18] sm:$0xff]  ;;  %v88_v10 = vld [vmem:[#allocation2 + $0x8] sm:$0x3]  ;;  %s4621_s3 = smov 64   ;;  %s4622_s1 = smov 96  }
  0x4b   :  { %3744 = vmatprep.mubr.msk.f32.mxu0 %vm4618_vm0, %v4619_v2  ;;  %4402 = vset.pattern.permute.xlu1 %v4616_v0  ;;  %v4754_v6 = vpack.c.bf16 %v96_v5, %v95_v4  ;;  %v87_v9 = vld [vmem:[#allocation2] sm:$0xff]  ;;  %vm4169_vm3 = vmpackc.low %vm203_vm1, %vm4620_vm2  ;;  %v4763_v11 = vpack.c.bf16 %v98_v8, %v97_v7  ;;  %v4772_v14 = vand.u32 127, %v119_v13  ;;  %v4783_v17 = vld [vmem:[#allocation6] sm:$0xff]  ;;  %s4623_s17 = smov 32   ;;  %vm318_vm9 = vcmask 261120  }
  0x4c   :  { %122 = vperm.xlu0 %4401, %v110_v3   ;;  %v4168_v12 = vpack.c.bf16 %v88_v10, %v87_v9  ;;  %v4787_v21 = vld [vmem:[#allocation4] sm:$0xff]  ;;  %v111_v36 = vld [vmem:[%s5408_s0 + $0x8] sm:$0xff]  ;;  %v113_v40 = vld [vmem:[%s5408_s0 + $0x18] sm:$0xff] }
  0x4d   :  { %4173 = vmatpush3.bf16.msra.mxu1 %v4754_v6  ;;  %v112_v39 = vld [vmem:[%s5408_s0 + $0x10] sm:$0xff]  ;;  %v115_v41 = vld [vmem:[%s5408_s0 + $0x28] sm:$0xff]  ;;  %v117_v42 = vld [vmem:[%s5408_s0 + $0x38] sm:$0xff] }
  0x4e   :  { %4174 = vmatprep.subr.bf16.mxu1 %v4617_v1  ;;  %4170 = vmatpush3.bf16.msk.msra.mxu0 %vm4169_vm3, %v4168_v12  ;;  %v89_v45 = vld [vmem:[%s5413_s5] sm:$0xff]  ;;  %v90_v46 = vld [vmem:[%s5413_s5 + $0x8] sm:$0xff]  ;;  %v91_v47 = vld [vmem:[%s5413_s5 + $0x10] sm:$0xff] }
  0x4f   :  { %4195 = vmatprep.subr.bf16.mxu0 %v4617_v1  ;;  %v4822_v48 = vpack.c.bf16 %v90_v46, %v89_v45  ;;  %v92_v49 = vld [vmem:[%s5413_s5 + $0x18] sm:$0xff]  ;;  %v114_v53 = vld [vmem:[%s5408_s0 + $0x20] sm:$0xff]  ;;  %v116_v54 = vld [vmem:[%s5408_s0 + $0x30] sm:$0xff] }
  0x50   :  { %v4828_v50 = vpack.c.bf16 %v92_v49, %v91_v47  ;;  %v118_v55 = vld [vmem:[%s5408_s0 + $0x40] sm:$0xff]  ;;  %v100_v61 = vld [vmem:[%s5415_s7 + $0x8] sm:$0xff]  ;;  %v101_v3 = vld [vmem:[%s5415_s7 + $0x10] sm:$0xff] }
  0x51   :  { %4176 = vmatpush3.bf16.msra.mxu1 %v4763_v11  ;;  %v99_v60 = vld [vmem:[%s5415_s7] sm:$0xff]  ;;  %v102_v4 = vld [vmem:[%s5415_s7 + $0x18] sm:$0xff] }
  0x52   :  { %4177 = vmatprep.subr.bf16.mxu1 %v4617_v1  ;;  %v4864_v63 = vpack.c.bf16 %v100_v61, %v99_v60  ;;  %v4874_v7 = vpack.c.bf16 %v102_v4, %v101_v3 }
  0x54   :  { %3780 = vmatmul.mubr.f32.vlgmr.msra.gmra.mrb[0].mxu1 %v4619_v2 }
  0x55   :  { %3790 = vmatprep.mubr.msk.f32.mxu1 %vm4618_vm0, %v4619_v2  ;;  %4179 = vmatpush3.bf16.msra.mxu1 %v4822_v48 }
  0x56   :  { %4180 = vmatprep.subr.bf16.mxu1 %v4617_v1 }
  0x59   :  { %4182 = vmatpush3.bf16.msra.mxu1 %v4828_v50 }
  0x5a   :  { %4183 = vmatprep.subr.bf16.mxu1 %v4617_v1 }
  0xcb   :  { %v123_v15 = vpop.permute.xlu0 %122 }
  0xcc   :  { %vm148_vm5 = vcmp.eq.s32.totalorder %v4772_v14, %v123_v15 }
  0xcd   :  { %v3478_v16 = vsel %vm148_vm5, 1.0, %v4619_v2 }
  0xce   :  { %3745 = vmatmul.mubr.msk.f32.vlgmr.msra.gmra.mrb[0].mxu0 %vm175_vm4, %v3478_v16 }
  0xcf   :  { %3747 = vmatprep.mubr.msk.f32.mxu0 %vm4618_vm0, %v4619_v2  ;;  %4197 = vmatpush3.bf16.msra.mxu0 %v4754_v6 }
  0xd0   :  { %4198 = vmatprep.subr.bf16.mxu0 %v4617_v1 }
  0xd3   :  { %4200 = vmatpush3.bf16.msra.mxu0 %v4763_v11 }
  0xd4   :  { %4207 = vmatprep.subr.bf16.mxu0 %v4617_v1 }
 0x127   :  { %v388_v18 = vpop.f32.mrb[0].mxu1 }
 0x128   :  { %v389_v19 = vadd.f32 %v388_v18, %v4783_v17  ;;  %v3781_v20 = vpop.f32.mrb[1].mxu1 }
 0x12a   :  { %400 = vrot.lane.b32.xlu0 %v389_v19, %s4621_s3 }
 0x19c   :  { %v401_v29 = vpop.permute.xlu0 %400 }
 0x1a1   :  { %v273_v22 = vpop.f32.mrb[0].mxu0 }
 0x1a2   :  { %v317_v23 = vadd.f32 %v273_v22, %v4787_v21  ;;  %v3746_v24 = vpop.f32.mrb[1].mxu0 }
 0x1a4   :  { %v392_v25 = vadd.f32 %v389_v19, %v317_v23 }
 0x1a6   :  { %v3497_v26 = vmul.f32 -1.442695, %v392_v25 }
 0x1a8   :  { %4403 = vpow2.f32 %v3497_v26 }
 0x1b2   :  { %v4404_v27 = vpop.eup %4403 }
 0x1b3   :  { %v396_v28 = vadd.f32 1.0, %v4404_v27  ;;  %v4920_v27 = vld [vmem:[#allocation7] sm:$0xff] }
 0x1b5   :  { %4405 = vrcp.f32 %v396_v28 }
 0x1bf   :  { %v4406_v30 = vpop.eup %4405 }
 0x1c0   :  { %v403_v31 = vmul.f32 %v4406_v30, %v401_v29 }
 0x1c2   :  { %405 = vrot.lane.b32.xlu1 %v403_v31, %s4621_s3 }
 0x234   :  { %v406_v32 = vpop.permute.xlu1 %405 }
 0x235   :  { %v408_v33 = vadd.f32 %v406_v32, %v317_v23 }
 0x237   :  { %4407 = vtanh.f32 %v408_v33 }
 0x241   :  { %v4408_v34 = vpop.eup %4407 }
 0x242   :  { %v410_v35 = vsub.f32 0.0, %v4408_v34 }
 0x244   :  { %412 = vrot.lane.b32.xlu1 %v410_v35, %s4622_s1 }
 0x248   :  { %125 = vperm.xlu1 %4402, %v111_v36  }
 0x2b6   :  { %v413_v37 = vpop.permute.xlu1 %412 }
 0x2b7   :  { %v415_v38 = vmul.f32 %v4406_v30, %v413_v37 }
 0x2b9   :  { %417 = vrot.lane.b32.xlu0 %v415_v38, %s4623_s17 }
 0x2bd   :  { %128 = vperm.xlu0 %4401, %v112_v39  }
 0x2c1   :  { %131 = vperm.xlu0 %4401, %v113_v40  }
 0x2c5   :  { %137 = vperm.xlu0 %4401, %v115_v41  }
 0x2c7   :  { %v126_v43 = vpop.permute.xlu1 %125 }
 0x2c8   :  { %vm149_vm6 = vcmp.eq.s32.totalorder %v4772_v14, %v126_v43 }
 0x2c9   :  { %143 = vperm.xlu0 %4401, %v117_v42   ;;  %v3479_v44 = vsel %vm149_vm6, 1.0, %v4619_v2 }
 0x2ca   :  { %3748 = vmatmul.mubr.msk.f32.gmra.mrb[2].mxu0 %vm175_vm4, %v3479_v44  ;;  %v4939_v44 = vld [vmem:[%s5414_s6] sm:$0xff] }
 0x2cb   :  { %3750 = vmatprep.mubr.msk.f32.mxu0 %vm4618_vm0, %v4619_v2 }
 0x32b   :  { %v418_v51 = vpop.permute.xlu0 %417 }
 0x32c   :  { %v4833_v52 = vadd.f32 %v4408_v34, %v418_v51 }
 0x32e   :  { %422 = vrot.lane.b32.xlu1 %v4833_v52, %s4621_s3 }
 0x332   :  { %134 = vperm.xlu1 %4402, %v114_v53  }
 0x336   :  { %140 = vperm.xlu1 %4402, %v116_v54  }
 0x33a   :  { %146 = vperm.xlu1 %4402, %v118_v55  }
 0x33c   :  { %v129_v56 = vpop.permute.xlu0 %128 }
 0x33d   :  { %vm150_vm7 = vcmp.eq.s32.totalorder %v4772_v14, %v129_v56 }
 0x33e   :  { %v3480_v57 = vsel %vm150_vm7, 1.0, %v4619_v2 }
 0x33f   :  { %3751 = vmatmul.mubr.msk.f32.gmra.mrb[4].mxu0 %vm175_vm4, %v3480_v57 }
 0x340   :  { %v132_v58 = vpop.permute.xlu0 %131  ;;  %3753 = vmatprep.mubr.msk.f32.mxu0 %vm4618_vm0, %v4619_v2 }
 0x341   :  { %vm151_vm8 = vcmp.eq.s32.totalorder %v4772_v14, %v132_v58 }
 0x342   :  { %v3481_v59 = vsel %vm151_vm8, 1.0, %v4619_v2 }
 0x343   :  { %3754 = vmatmul.mubr.msk.f32.gmra.mrb[6].mxu0 %vm175_vm4, %v3481_v59 }
 0x344   :  { %3756 = vmatprep.mubr.msk.f32.mxu0 %vm4618_vm0, %v4619_v2  ;;  %v138_v8 = vpop.permute.xlu0 %137 }
 0x345   :  { %vm153_vm11 = vcmp.eq.s32.totalorder %v4772_v14, %v138_v8 }
 0x346   :  { %v3483_v13 = vsel %vm153_vm11, 1.0, %v4619_v2 }
 0x348   :  { %v144_v15 = vpop.permute.xlu0 %143 }
 0x349   :  { %vm155_vm13 = vcmp.eq.s32.totalorder %v4772_v14, %v144_v15 }
 0x34a   :  { %v3485_v19 = vsel %vm155_vm13, 1.0, %v4619_v2 }
 0x39d   :  { %v4862_v62 = vpop.f32.mrb[2].mxu0 }
 0x39e   :  { %v3749_v0 = vpop.f32.mrb[3].mxu0  ;;  %v671_v53 = vadd.f32 %v4862_v62, %v4787_v21 }
 0x3a0   :  { %v423_v5 = vpop.permute.xlu1 %422 }
 0x3a1   :  { %3791 = vmatmul.mubr.msk.f32.vlgmr.msra.gmra.mrb[2].mxu1 %vm318_vm9, %v423_v5 }
 0x3a2   :  { %4185 = vmatpush3.bf16.msra.mxu1 %v4864_v63  ;;  %3801 = vmatprep.mubr.msk.f32.mxu1 %vm4618_vm0, %v4619_v2 }
 0x3a3   :  { %4186 = vmatprep.subr.bf16.mxu1 %v4617_v1 }
 0x3a6   :  { %4188 = vmatpush3.bf16.msra.mxu1 %v4874_v7 }
 0x3a7   :  { %4189 = vmatprep.subr.bf16.mxu1 %v4617_v1 }
 0x3a9   :  { %3802 = vmatmul.mubr.f32.vlgmr.msra.gmra.mrb[4].mxu1 %v4619_v2 }
 0x3aa   :  { %3812 = vmatprep.mubr.msk.f32.mxu1 %vm4618_vm0, %v4619_v2 }
 0x3b1   :  { %v135_v9 = vpop.permute.xlu1 %134 }
 0x3b2   :  { %vm152_vm10 = vcmp.eq.s32.totalorder %v4772_v14, %v135_v9 }
 0x3b3   :  { %v3482_v10 = vsel %vm152_vm10, 1.0, %v4619_v2 }
 0x3b4   :  { %3757 = vmatmul.mubr.msk.f32.gmra.mrb[8].mxu0 %vm175_vm4, %v3482_v10 }
 0x3b5   :  { %v141_v12 = vpop.permute.xlu1 %140  ;;  %3759 = vmatprep.mubr.msk.f32.mxu0 %vm4618_vm0, %v4619_v2 }
 0x3b6   :  { %vm154_vm12 = vcmp.eq.s32.totalorder %v4772_v14, %v141_v12 }
 0x3b7   :  { %v3484_v16 = vsel %vm154_vm12, 1.0, %v4619_v2 }
 0x3b8   :  { %3760 = vmatmul.mubr.msk.f32.gmra.mrb[10].mxu0 %vm175_vm4, %v3483_v13 }
 0x3b9   :  { %3762 = vmatprep.mubr.msk.f32.mxu0 %vm4618_vm0, %v4619_v2  ;;  %v147_v18 = vpop.permute.xlu1 %146 }
 0x3ba   :  { %vm156_vm14 = vcmp.eq.s32.totalorder %v4772_v14, %v147_v18  ;;  %v105_v18 = vld [vmem:[%s5417_s9] sm:$0xff] }
 0x3bb   :  { %v3486_v20 = vsel %vm156_vm14, 1.0, %v4619_v2 }
 0x3bc   :  { %3763 = vmatmul.mubr.msk.f32.gmra.mrb[12].mxu0 %vm175_vm4, %v3484_v16 }
 0x3bd   :  { %3765 = vmatprep.mubr.msk.f32.mxu0 %vm4618_vm0, %v4619_v2 }
 0x3c0   :  { %3766 = vmatmul.mubr.msk.f32.gmra.mrb[14].mxu0 %vm175_vm4, %v3485_v19  ;;  %v106_v19 = vld [vmem:[%s5417_s9 + $0x8] sm:$0xff] }
 0x3c1   :  { %3768 = vmatprep.mubr.msk.f32.mxu0 %vm4618_vm0, %v4619_v2 }
 0x3c4   :  { %3769 = vmatmul.mubr.msk.f32.gmra.mrb[16].mxu0 %vm175_vm4, %v3486_v20  ;;  %v107_v20 = vld [vmem:[%s5417_s9 + $0x10] sm:$0xff] }
 0x3c5   :  { %3823 = vmatprep.mubr.msk.f32.mxu0 %vm4618_vm0, %v4619_v2 }
 0x3c8   :  { %3824 = vmatmul.mubr.msk.f32.vlgmr.msra.gmra.mrb[18].mxu0 %vm318_vm9, %v423_v5 }
 0x3c9   :  { %4209 = vmatpush3.bf16.msra.mxu0 %v4864_v63  ;;  %3845 = vmatprep.mubr.msk.f32.mxu0 %vm4618_vm0, %v4619_v2 }
 0x3ca   :  { %4210 = vmatprep.subr.bf16.mxu0 %v4617_v1 }
 0x3cd   :  { %4212 = vmatpush3.bf16.msra.mxu0 %v4874_v7 }
 0x3ce   :  { %4219 = vmatprep.subr.bf16.mxu0 %v4617_v1 }
 0x412   :  { %v4916_v14 = vpop.f32.mrb[4].mxu0 }
 0x413   :  { %v3752_v22 = vpop.f32.mrb[5].mxu0 }
 0x414   :  { %v4959_v22 = vpack.c.bf16 %v106_v19, %v105_v18 }
 0x416   :  { %v4918_v23 = vpop.f32.mrb[6].mxu0  ;;  %4191 = vmatpush3.bf16.msra.mxu1 %v4959_v22 }
 0x417   :  { %v3755_v24 = vpop.f32.mrb[7].mxu0  ;;  %4192 = vmatprep.subr.bf16.mxu1 %v4617_v1 }
 0x474   :  { %v492_v25 = vpop.f32.mrb[2].mxu1 }
 0x475   :  { %v3792_v26 = vpop.f32.mrb[3].mxu1  ;;  %v493_v45 = vadd.f32 %v492_v25, %v4939_v44 }
 0x47c   :  { %v562_v28 = vpop.f32.mrb[4].mxu1 }
 0x47d   :  { %v563_v29 = vadd.f32 %v562_v28, %v4920_v27  ;;  %v3803_v30 = vpop.f32.mrb[5].mxu1 }
 0x47f   :  { %574 = vrot.lane.b32.xlu0 %v563_v29, %s4621_s3  ;;  %v566_v46 = vadd.f32 %v563_v29, %v493_v45 }
 0x481   :  { %v3499_v47 = vmul.f32 -1.442695, %v566_v46 }
 0x483   :  { %4409 = vpow2.f32 %v3499_v47 }
 0x487   :  { %v4924_v31 = vpop.f32.mrb[8].mxu0 }
 0x488   :  { %v3758_v32 = vpop.f32.mrb[9].mxu0 }
 0x48b   :  { %v4926_v33 = vpop.f32.mrb[10].mxu0 }
 0x48c   :  { %v3761_v34 = vpop.f32.mrb[11].mxu0 }
 0x48d   :  { %v4410_v49 = vpop.eup %4409 }
 0x48e   :  { %v570_v51 = vadd.f32 1.0, %v4410_v49 }
 0x48f   :  { %v4928_v35 = vpop.f32.mrb[12].mxu0 }
 0x490   :  { %v3764_v36 = vpop.f32.mrb[13].mxu0  ;;  %4411 = vrcp.f32 %v570_v51 }
 0x493   :  { %v4930_v37 = vpop.f32.mrb[14].mxu0 }
 0x494   :  { %v3767_v38 = vpop.f32.mrb[15].mxu0 }
 0x495   :  { %v5010_v38 = vld [vmem:[%s5418_s10] sm:$0xff] }
 0x497   :  { %v4932_v39 = vpop.f32.mrb[16].mxu0 }
 0x498   :  { %v3770_v40 = vpop.f32.mrb[17].mxu0 }
 0x49a   :  { %v4412_v55 = vpop.eup %4411 }
 0x49b   :  { %v738_v41 = vpop.f32.mrb[18].mxu0 }
 0x49c   :  { %v739_v42 = vadd.f32 %v738_v41, %v4783_v17  ;;  %v3825_v43 = vpop.f32.mrb[19].mxu0 }
 0x49e   :  { %750 = vrot.lane.b32.xlu1 %v739_v42, %s4621_s3  ;;  %v742_v54 = vadd.f32 %v739_v42, %v671_v53 }
 0x4a0   :  { %v3502_v56 = vmul.f32 -1.442695, %v742_v54 }
 0x4a2   :  { %4413 = vpow2.f32 %v3502_v56 }
 0x4ac   :  { %v4414_v59 = vpop.eup %4413 }
 0x4ad   :  { %v746_v60 = vadd.f32 1.0, %v4414_v59 }
 0x4af   :  { %4415 = vrcp.f32 %v746_v60  ;;  %v1021_v60 = vadd.f32 %v4916_v14, %v4787_v21 }
 0x4b9   :  { %v4416_v61 = vpop.eup %4415 }
 0x4f1   :  { %v575_v57 = vpop.permute.xlu0 %574 }
 0x4f2   :  { %v577_v58 = vmul.f32 %v4412_v55, %v575_v57 }
 0x4f4   :  { %579 = vrot.lane.b32.xlu0 %v577_v58, %s4621_s3 }
 0x510   :  { %v751_v0 = vpop.permute.xlu1 %750 }
 0x511   :  { %v753_v3 = vmul.f32 %v4416_v61, %v751_v0 }
 0x513   :  { %755 = vrot.lane.b32.xlu1 %v753_v3, %s4621_s3 }
 0x566   :  { %v580_v4 = vpop.permute.xlu0 %579 }
 0x567   :  { %v582_v5 = vadd.f32 %v580_v4, %v493_v45 }
 0x569   :  { %4417 = vtanh.f32 %v582_v5 }
 0x573   :  { %v4418_v62 = vpop.eup %4417 }
 0x574   :  { %v584_v8 = vsub.f32 0.0, %v4418_v62 }
 0x576   :  { %586 = vrot.lane.b32.xlu0 %v584_v8, %s4622_s1 }
 0x585   :  { %v756_v9 = vpop.permute.xlu1 %755 }
 0x586   :  { %v758_v10 = vadd.f32 %v756_v9, %v671_v53 }
 0x588   :  { %4419 = vtanh.f32 %v758_v10 }
 0x592   :  { %v4420_v12 = vpop.eup %4419 }
 0x593   :  { %v760_v13 = vsub.f32 %v4833_v52, %v4420_v12  ;;  %v108_v52 = vld [vmem:[%s5417_s9 + $0x18] sm:$0xff] }
 0x594   :  { %v4965_v24 = vpack.c.bf16 %v108_v52, %v107_v20 }
 0x595   :  { %762 = vrot.lane.b32.xlu1 %v760_v13, %s4622_s1 }
 0x596   :  { %4194 = vmatpush3.bf16.msra.mxu1 %v4965_v24 }
 0x597   :  { %4201 = vmatprep.subr.bf16.mxu1 %v4617_v1 }
 0x5e8   :  { %v587_v15 = vpop.permute.xlu0 %586 }
 0x5e9   :  { %v589_v16 = vmul.f32 %v4412_v55, %v587_v15 }
 0x5eb   :  { %591 = vrot.lane.b32.xlu0 %v589_v16, %s4623_s17 }
 0x607   :  { %v763_v25 = vpop.permute.xlu1 %762 }
 0x608   :  { %v765_v26 = vmul.f32 %v4416_v61, %v763_v25 }
 0x60a   :  { %767 = vrot.lane.b32.xlu1 %v765_v26, %s4623_s17 }
 0x65d   :  { %v592_v28 = vpop.permute.xlu0 %591 }
 0x65e   :  { %v4971_v29 = vadd.f32 %v4418_v62, %v592_v28 }
 0x660   :  { %596 = vrot.lane.b32.xlu0 %v4971_v29, %s4621_s3 }
 0x67c   :  { %v768_v30 = vpop.permute.xlu1 %767 }
 0x67d   :  { %v4975_v32 = vadd.f32 %v4420_v12, %v768_v30 }
 0x67f   :  { %772 = vrot.lane.b32.xlu1 %v4975_v32, %s4621_s3 }
 0x6d2   :  { %v597_v34 = vpop.permute.xlu0 %596 }
 0x6d3   :  { %3813 = vmatmul.mubr.msk.f32.vlgmr.msra.gmra.mrb[6].mxu1 %vm318_vm9, %v597_v34  ;;  %3846 = vmatmul.mubr.msk.f32.vlgmr.msra.gmra.mrb[20].mxu0 %vm318_vm9, %v597_v34 }
 0x6d4   :  { %4203 = vmatpush3.bf16.msra.mxu1 %v4822_v48  ;;  %4221 = vmatpush3.bf16.msra.mxu0 %v4754_v6 }
 0x6d5   :  { %4204 = vmatprep.subr.bf16.mxu1 %v4617_v1  ;;  %4222 = vmatprep.subr.bf16.mxu0 %v4617_v1 }
 0x6d6   :  { %3834 = vmatprep.mubr.msk.f32.mxu1 %vm4618_vm0, %v4619_v2  ;;  %3867 = vmatprep.mubr.msk.f32.mxu0 %vm4618_vm0, %v4619_v2 }
 0x6d8   :  { %4206 = vmatpush3.bf16.msra.mxu1 %v4828_v50  ;;  %4224 = vmatpush3.bf16.msra.mxu0 %v4763_v11 }
 0x6d9   :  { %4213 = vmatprep.subr.bf16.mxu1 %v4617_v1  ;;  %4231 = vmatprep.subr.bf16.mxu0 %v4617_v1 }
 0x6f1   :  { %v773_v36 = vpop.permute.xlu1 %772 }
 0x6f2   :  { %3835 = vmatmul.mubr.msk.f32.vlgmr.msra.gmra.mrb[8].mxu1 %vm318_vm9, %v773_v36  ;;  %3868 = vmatmul.mubr.msk.f32.vlgmr.msra.gmra.mrb[22].mxu0 %vm318_vm9, %v773_v36 }
 0x6f3   :  { %4215 = vmatpush3.bf16.msra.mxu1 %v4959_v22  ;;  %4233 = vmatpush3.bf16.msra.mxu0 %v4864_v63 }
 0x6f4   :  { %4216 = vmatprep.subr.bf16.mxu1 %v4617_v1  ;;  %4234 = vmatprep.subr.bf16.mxu0 %v4617_v1 }
 0x6f5   :  { %3856 = vmatprep.mubr.msk.f32.mxu1 %vm4618_vm0, %v4619_v2  ;;  %3889 = vmatprep.mubr.msk.f32.mxu0 %vm4618_vm0, %v4619_v2 }
 0x6f7   :  { %4218 = vmatpush3.bf16.msra.mxu1 %v4965_v24  ;;  %4236 = vmatpush3.bf16.msra.mxu0 %v4874_v7 }
 0x6f8   :  { %4225 = vmatprep.subr.bf16.mxu1 %v4617_v1  ;;  %4243 = vmatprep.subr.bf16.mxu0 %v4617_v1 }
 0x7a6   :  { %v666_v40 = vpop.f32.mrb[6].mxu1  ;;  %v912_v41 = vpop.f32.mrb[20].mxu0 }
 0x7a7   :  { %v667_v42 = vadd.f32 %v666_v40, %v5010_v38  ;;  %v913_v43 = vadd.f32 %v912_v41, %v4920_v27  ;;  %v3814_v45 = vpop.f32.mrb[7].mxu1  ;;  %v3847_v46 = vpop.f32.mrb[21].mxu0 }
 0x7a9   :  { %670 = vst [vmem:[%s5419_s11] sm:$0xff] %v667_v42  ;;  %924 = vrot.lane.b32.xlu0 %v913_v43, %s4621_s3 }
 0x7c5   :  { %v842_v47 = vpop.f32.mrb[8].mxu1  ;;  %v1088_v49 = vpop.f32.mrb[22].mxu0 }
 0x7c6   :  { %v1089_v51 = vadd.f32 %v1088_v49, %v4783_v17  ;;  %v3836_v53 = vpop.f32.mrb[9].mxu1  ;;  %v3869_v54 = vpop.f32.mrb[23].mxu0  ;;  %v843_v55 = vadd.f32 %v842_v47, %v4939_v44 }
 0x7c8   :  { %1100 = vrot.lane.b32.xlu1 %v1089_v51, %s4621_s3  ;;  %v916_v56 = vadd.f32 %v913_v43, %v843_v55  ;;  %v1092_v61 = vadd.f32 %v1089_v51, %v1021_v60 }
 0x7ca   :  { %v3505_v57 = vmul.f32 -1.442695, %v916_v56  ;;  %v3508_v3 = vmul.f32 -1.442695, %v1092_v61 }
 0x7cc   :  { %4421 = vpow2.f32 %v3505_v57 }
 0x7d6   :  { %v4422_v58 = vpop.eup %4421 }
 0x7d7   :  { %v920_v59 = vadd.f32 1.0, %v4422_v58 }
 0x7d9   :  { %4423 = vrcp.f32 %v920_v59 }
 0x7da   :  { %4425 = vpow2.f32 %v3508_v3 }
 0x7e3   :  { %v4424_v0 = vpop.eup %4423 }
 0x7e4   :  { %v4426_v62 = vpop.eup %4425 }
 0x7e5   :  { %v1096_v8 = vadd.f32 1.0, %v4426_v62 }
 0x7e7   :  { %4427 = vrcp.f32 %v1096_v8 }
 0x7f1   :  { %v4428_v9 = vpop.eup %4427 }
 0x81b   :  { %v925_v4 = vpop.permute.xlu0 %924 }
 0x81c   :  { %v927_v5 = vmul.f32 %v4424_v0, %v925_v4 }
 0x81e   :  { %929 = vrot.lane.b32.xlu0 %v927_v5, %s4621_s3 }
 0x83a   :  { %v1101_v10 = vpop.permute.xlu1 %1100 }
 0x83b   :  { %v1103_v12 = vmul.f32 %v4428_v9, %v1101_v10 }
 0x83d   :  { %1105 = vrot.lane.b32.xlu1 %v1103_v12, %s4621_s3 }
 0x890   :  { %v930_v13 = vpop.permute.xlu0 %929 }
 0x891   :  { %v932_v15 = vadd.f32 %v930_v13, %v843_v55 }
 0x893   :  { %4429 = vtanh.f32 %v932_v15 }
 0x89d   :  { %v4430_v14 = vpop.eup %4429 }
 0x89e   :  { %v934_v16 = vsub.f32 %v4971_v29, %v4430_v14 }
 0x8a0   :  { %936 = vrot.lane.b32.xlu0 %v934_v16, %s4622_s1 }
 0x8af   :  { %v1106_v18 = vpop.permute.xlu1 %1105 }
 0x8b0   :  { %v1108_v19 = vadd.f32 %v1106_v18, %v1021_v60 }
 0x8b2   :  { %4431 = vtanh.f32 %v1108_v19 }
 0x8bc   :  { %v4432_v20 = vpop.eup %4431 }
 0x8bd   :  { %v1110_v52 = vsub.f32 %v4975_v32, %v4432_v20 }
 0x8bf   :  { %1112 = vrot.lane.b32.xlu1 %v1110_v52, %s4622_s1 }
 0x912   :  { %v937_v25 = vpop.permute.xlu0 %936 }
 0x913   :  { %v939_v26 = vmul.f32 %v4424_v0, %v937_v25  ;;  %v1371_v0 = vadd.f32 %v4918_v23, %v4787_v21 }
 0x915   :  { %941 = vrot.lane.b32.xlu0 %v939_v26, %s4623_s17 }
 0x931   :  { %v1113_v28 = vpop.permute.xlu1 %1112 }
 0x932   :  { %v1115_v30 = vmul.f32 %v4428_v9, %v1113_v28 }
 0x934   :  { %1117 = vrot.lane.b32.xlu1 %v1115_v30, %s4623_s17 }
 0x987   :  { %v942_v34 = vpop.permute.xlu0 %941 }
 0x988   :  { %v5031_v29 = vadd.f32 %v4430_v14, %v942_v34 }
 0x98a   :  { %946 = vrot.lane.b32.xlu0 %v5031_v29, %s4621_s3 }
 0x9a6   :  { %v1118_v36 = vpop.permute.xlu1 %1117 }
 0x9a7   :  { %v5035_v40 = vadd.f32 %v4432_v20, %v1118_v36 }
 0x9a9   :  { %1122 = vrot.lane.b32.xlu1 %v5035_v40, %s4621_s3 }
 0x9fc   :  { %v947_v32 = vpop.permute.xlu0 %946 }
 0x9fd   :  { %3857 = vmatmul.mubr.msk.f32.vlgmr.msra.gmra.mrb[10].mxu1 %vm318_vm9, %v947_v32  ;;  %3890 = vmatmul.mubr.msk.f32.vlgmr.msra.gmra.mrb[24].mxu0 %vm318_vm9, %v947_v32 }
 0x9fe   :  { %4227 = vmatpush3.bf16.msra.mxu1 %v4822_v48  ;;  %4245 = vmatpush3.bf16.msra.mxu0 %v4754_v6 }
 0x9ff   :  { %4228 = vmatprep.subr.bf16.mxu1 %v4617_v1  ;;  %4246 = vmatprep.subr.bf16.mxu0 %v4617_v1 }
 0xa00   :  { %3878 = vmatprep.mubr.msk.f32.mxu1 %vm4618_vm0, %v4619_v2  ;;  %3911 = vmatprep.mubr.msk.f32.mxu0 %vm4618_vm0, %v4619_v2 }
 0xa02   :  { %4230 = vmatpush3.bf16.msra.mxu1 %v4828_v50  ;;  %4248 = vmatpush3.bf16.msra.mxu0 %v4763_v11 }
 0xa03   :  { %4237 = vmatprep.subr.bf16.mxu1 %v4617_v1  ;;  %4255 = vmatprep.subr.bf16.mxu0 %v4617_v1 }
 0xa1b   :  { %v1123_v41 = vpop.permute.xlu1 %1122 }
 0xa1c   :  { %3879 = vmatmul.mubr.msk.f32.vlgmr.msra.gmra.mrb[12].mxu1 %vm318_vm9, %v1123_v41  ;;  %3912 = vmatmul.mubr.msk.f32.vlgmr.msra.gmra.mrb[26].mxu0 %vm318_vm9, %v1123_v41 }
 0xa1d   :  { %4239 = vmatpush3.bf16.msra.mxu1 %v4959_v22  ;;  %4257 = vmatpush3.bf16.msra.mxu0 %v4864_v63 }
 0xa1e   :  { %4240 = vmatprep.subr.bf16.mxu1 %v4617_v1  ;;  %4258 = vmatprep.subr.bf16.mxu0 %v4617_v1 }
 0xa1f   :  { %3900 = vmatprep.mubr.msk.f32.mxu1 %vm4618_vm0, %v4619_v2  ;;  %3933 = vmatprep.mubr.msk.f32.mxu0 %vm4618_vm0, %v4619_v2 }
 0xa21   :  { %4242 = vmatpush3.bf16.msra.mxu1 %v4965_v24  ;;  %4260 = vmatpush3.bf16.msra.mxu0 %v4874_v7 }
 0xa22   :  { %4249 = vmatprep.subr.bf16.mxu1 %v4617_v1  ;;  %4267 = vmatprep.subr.bf16.mxu0 %v4617_v1 }
 0xad0   :  { %v1016_v42 = vpop.f32.mrb[10].mxu1  ;;  %v1262_v43 = vpop.f32.mrb[24].mxu0 }
 0xad1   :  { %v1017_v45 = vadd.f32 %v1016_v42, %v5010_v38  ;;  %v1263_v46 = vadd.f32 %v1262_v43, %v4920_v27  ;;  %v3858_v47 = vpop.f32.mrb[11].mxu1  ;;  %v3891_v49 = vpop.f32.mrb[25].mxu0 }
 0xad3   :  { %1020 = vst [vmem:[%s5419_s11 + $0x8] sm:$0xff] %v1017_v45  ;;  %1274 = vrot.lane.b32.xlu0 %v1263_v46, %s4621_s3 }
 0xaef   :  { %v1192_v51 = vpop.f32.mrb[12].mxu1  ;;  %v1438_v53 = vpop.f32.mrb[26].mxu0 }
 0xaf0   :  { %v1439_v54 = vadd.f32 %v1438_v53, %v4783_v17  ;;  %v3880_v55 = vpop.f32.mrb[13].mxu1  ;;  %v3913_v56 = vpop.f32.mrb[27].mxu0  ;;  %v1193_v57 = vadd.f32 %v1192_v51, %v4939_v44 }
 0xaf2   :  { %1450 = vrot.lane.b32.xlu1 %v1439_v54, %s4621_s3  ;;  %v1266_v58 = vadd.f32 %v1263_v46, %v1193_v57  ;;  %v1442_v3 = vadd.f32 %v1439_v54, %v1371_v0 }
 0xaf4   :  { %v3511_v59 = vmul.f32 -1.442695, %v1266_v58  ;;  %v3514_v5 = vmul.f32 -1.442695, %v1442_v3  ;;  %v1721_v3 = vadd.f32 %v4924_v31, %v4787_v21 }
 0xaf6   :  { %4433 = vpow2.f32 %v3511_v59 }
 0xb00   :  { %v4434_v60 = vpop.eup %4433 }
 0xb01   :  { %v1270_v61 = vadd.f32 1.0, %v4434_v60 }
 0xb03   :  { %4435 = vrcp.f32 %v1270_v61 }
 0xb04   :  { %4437 = vpow2.f32 %v3514_v5 }
 0xb0d   :  { %v4436_v4 = vpop.eup %4435 }
 0xb0e   :  { %v4438_v9 = vpop.eup %4437 }
 0xb0f   :  { %v1446_v10 = vadd.f32 1.0, %v4438_v9 }
 0xb11   :  { %4439 = vrcp.f32 %v1446_v10 }
 0xb1b   :  { %v4440_v12 = vpop.eup %4439 }
 0xb45   :  { %v1275_v62 = vpop.permute.xlu0 %1274 }
 0xb46   :  { %v1277_v8 = vmul.f32 %v4436_v4, %v1275_v62 }
 0xb48   :  { %1279 = vrot.lane.b32.xlu0 %v1277_v8, %s4621_s3 }
 0xb64   :  { %v1451_v13 = vpop.permute.xlu1 %1450 }
 0xb65   :  { %v1453_v15 = vmul.f32 %v4440_v12, %v1451_v13 }
 0xb67   :  { %1455 = vrot.lane.b32.xlu1 %v1453_v15, %s4621_s3 }
 0xbba   :  { %v1280_v14 = vpop.permute.xlu0 %1279 }
 0xbbb   :  { %v1282_v16 = vadd.f32 %v1280_v14, %v1193_v57 }
 0xbbd   :  { %4441 = vtanh.f32 %v1282_v16 }
 0xbc7   :  { %v4442_v23 = vpop.eup %4441 }
 0xbc8   :  { %v1284_v18 = vsub.f32 %v5031_v29, %v4442_v23 }
 0xbca   :  { %1286 = vrot.lane.b32.xlu0 %v1284_v18, %s4622_s1 }
 0xbd9   :  { %v1456_v19 = vpop.permute.xlu1 %1455 }
 0xbda   :  { %v1458_v20 = vadd.f32 %v1456_v19, %v1371_v0 }
 0xbdc   :  { %4443 = vtanh.f32 %v1458_v20 }
 0xbe6   :  { %v4444_v52 = vpop.eup %4443 }
 0xbe7   :  { %v1460_v25 = vsub.f32 %v5035_v40, %v4444_v52 }
 0xbe9   :  { %1462 = vrot.lane.b32.xlu1 %v1460_v25, %s4622_s1 }
 0xc3c   :  { %v1287_v26 = vpop.permute.xlu0 %1286 }
 0xc3d   :  { %v1289_v28 = vmul.f32 %v4436_v4, %v1287_v26 }
 0xc3f   :  { %1291 = vrot.lane.b32.xlu0 %v1289_v28, %s4623_s17 }
 0xc5b   :  { %v1463_v30 = vpop.permute.xlu1 %1462 }
 0xc5c   :  { %v1465_v34 = vmul.f32 %v4440_v12, %v1463_v30 }
 0xc5e   :  { %1467 = vrot.lane.b32.xlu1 %v1465_v34, %s4623_s17 }
 0xcb1   :  { %v1292_v36 = vpop.permute.xlu0 %1291 }
 0xcb2   :  { %v5086_v29 = vadd.f32 %v4442_v23, %v1292_v36 }
 0xcb4   :  { %1296 = vrot.lane.b32.xlu0 %v5086_v29, %s4621_s3 }
 0xcd0   :  { %v1468_v32 = vpop.permute.xlu1 %1467 }
 0xcd1   :  { %v5090_v41 = vadd.f32 %v4444_v52, %v1468_v32 }
 0xcd3   :  { %1472 = vrot.lane.b32.xlu1 %v5090_v41, %s4621_s3 }
 0xd26   :  { %v1297_v40 = vpop.permute.xlu0 %1296 }
 0xd27   :  { %3901 = vmatmul.mubr.msk.f32.vlgmr.msra.gmra.mrb[14].mxu1 %vm318_vm9, %v1297_v40  ;;  %3934 = vmatmul.mubr.msk.f32.vlgmr.msra.gmra.mrb[28].mxu0 %vm318_vm9, %v1297_v40 }
 0xd28   :  { %4251 = vmatpush3.bf16.msra.mxu1 %v4822_v48  ;;  %4269 = vmatpush3.bf16.msra.mxu0 %v4754_v6 }
 0xd29   :  { %4252 = vmatprep.subr.bf16.mxu1 %v4617_v1  ;;  %4270 = vmatprep.subr.bf16.mxu0 %v4617_v1 }
 0xd2a   :  { %3922 = vmatprep.mubr.msk.f32.mxu1 %vm4618_vm0, %v4619_v2  ;;  %3955 = vmatprep.mubr.msk.f32.mxu0 %vm4618_vm0, %v4619_v2 }
 0xd2c   :  { %4254 = vmatpush3.bf16.msra.mxu1 %v4828_v50  ;;  %4272 = vmatpush3.bf16.msra.mxu0 %v4763_v11 }
 0xd2d   :  { %4261 = vmatprep.subr.bf16.mxu1 %v4617_v1  ;;  %4279 = vmatprep.subr.bf16.mxu0 %v4617_v1 }
 0xd45   :  { %v1473_v42 = vpop.permute.xlu1 %1472 }
 0xd46   :  { %3923 = vmatmul.mubr.msk.f32.vlgmr.msra.gmra.mrb[16].mxu1 %vm318_vm9, %v1473_v42  ;;  %3956 = vmatmul.mubr.msk.f32.vlgmr.msra.gmra.mrb[30].mxu0 %vm318_vm9, %v1473_v42 }
 0xd47   :  { %4263 = vmatpush3.bf16.msra.mxu1 %v4959_v22  ;;  %4281 = vmatpush3.bf16.msra.mxu0 %v4864_v63 }
 0xd48   :  { %4264 = vmatprep.subr.bf16.mxu1 %v4617_v1  ;;  %4282 = vmatprep.subr.bf16.mxu0 %v4617_v1 }
 0xd49   :  { %3944 = vmatprep.mubr.msk.f32.mxu1 %vm4618_vm0, %v4619_v2  ;;  %3977 = vmatprep.mubr.msk.f32.mxu0 %vm4618_vm0, %v4619_v2 }
 0xd4b   :  { %4266 = vmatpush3.bf16.msra.mxu1 %v4965_v24  ;;  %4284 = vmatpush3.bf16.msra.mxu0 %v4874_v7 }
 0xd4c   :  { %4273 = vmatprep.subr.bf16.mxu1 %v4617_v1  ;;  %4291 = vmatprep.subr.bf16.mxu0 %v4617_v1 }
 0xdfa   :  { %v1366_v43 = vpop.f32.mrb[14].mxu1  ;;  %v1612_v45 = vpop.f32.mrb[28].mxu0 }
 0xdfb   :  { %v1367_v46 = vadd.f32 %v1366_v43, %v5010_v38  ;;  %v1613_v47 = vadd.f32 %v1612_v45, %v4920_v27  ;;  %v3902_v49 = vpop.f32.mrb[15].mxu1  ;;  %v3935_v51 = vpop.f32.mrb[29].mxu0 }
 0xdfd   :  { %1370 = vst [vmem:[%s5419_s11 + $0x10] sm:$0xff] %v1367_v46  ;;  %1624 = vrot.lane.b32.xlu0 %v1613_v47, %s4621_s3 }
 0xe19   :  { %v1542_v53 = vpop.f32.mrb[16].mxu1  ;;  %v1788_v54 = vpop.f32.mrb[30].mxu0 }
 0xe1a   :  { %v1789_v55 = vadd.f32 %v1788_v54, %v4783_v17  ;;  %v3924_v56 = vpop.f32.mrb[17].mxu1  ;;  %v3957_v57 = vpop.f32.mrb[31].mxu0  ;;  %v1543_v58 = vadd.f32 %v1542_v53, %v4939_v44 }
 0xe1c   :  { %1800 = vrot.lane.b32.xlu1 %v1789_v55, %s4621_s3  ;;  %v1616_v59 = vadd.f32 %v1613_v47, %v1543_v58  ;;  %v1792_v4 = vadd.f32 %v1789_v55, %v1721_v3 }
 0xe1e   :  { %v3517_v60 = vmul.f32 -1.442695, %v1616_v59  ;;  %v3520_v62 = vmul.f32 -1.442695, %v1792_v4 }
 0xe20   :  { %4445 = vpow2.f32 %v3517_v60 }
 0xe2a   :  { %v4446_v61 = vpop.eup %4445 }
 0xe2b   :  { %v1620_v0 = vadd.f32 1.0, %v4446_v61 }
 0xe2d   :  { %4447 = vrcp.f32 %v1620_v0 }
 0xe2e   :  { %4449 = vpow2.f32 %v3520_v62 }
 0xe37   :  { %v4448_v5 = vpop.eup %4447 }
 0xe38   :  { %v4450_v10 = vpop.eup %4449 }
 0xe39   :  { %v1796_v12 = vadd.f32 1.0, %v4450_v10 }
 0xe3b   :  { %4451 = vrcp.f32 %v1796_v12 }
 0xe45   :  { %v4452_v13 = vpop.eup %4451 }
 0xe6f   :  { %v1625_v8 = vpop.permute.xlu0 %1624 }
 0xe70   :  { %v1627_v9 = vmul.f32 %v4448_v5, %v1625_v8 }
 0xe72   :  { %1629 = vrot.lane.b32.xlu0 %v1627_v9, %s4621_s3 }
 0xe8e   :  { %v1801_v15 = vpop.permute.xlu1 %1800 }
 0xe8f   :  { %v1803_v14 = vmul.f32 %v4452_v13, %v1801_v15 }
 0xe91   :  { %1805 = vrot.lane.b32.xlu1 %v1803_v14, %s4621_s3 }
 0xee4   :  { %v1630_v16 = vpop.permute.xlu0 %1629 }
 0xee5   :  { %v1632_v23 = vadd.f32 %v1630_v16, %v1543_v58 }
 0xee7   :  { %4453 = vtanh.f32 %v1632_v23 }
 0xef1   :  { %v4454_v31 = vpop.eup %4453 }
 0xef2   :  { %v1634_v18 = vsub.f32 %v5086_v29, %v4454_v31 }
 0xef4   :  { %1636 = vrot.lane.b32.xlu0 %v1634_v18, %s4622_s1 }
 0xf03   :  { %v1806_v19 = vpop.permute.xlu1 %1805 }
 0xf04   :  { %v1808_v20 = vadd.f32 %v1806_v19, %v1721_v3  ;;  %v2071_v3 = vadd.f32 %v4926_v33, %v4787_v21 }
 0xf06   :  { %4455 = vtanh.f32 %v1808_v20 }
 0xf10   :  { %v4456_v52 = vpop.eup %4455 }
 0xf11   :  { %v1810_v25 = vsub.f32 %v5090_v41, %v4456_v52 }
 0xf13   :  { %1812 = vrot.lane.b32.xlu1 %v1810_v25, %s4622_s1 }
 0xf66   :  { %v1637_v26 = vpop.permute.xlu0 %1636 }
 0xf67   :  { %v1639_v28 = vmul.f32 %v4448_v5, %v1637_v26 }
 0xf69   :  { %1641 = vrot.lane.b32.xlu0 %v1639_v28, %s4623_s17 }
 0xf85   :  { %v1813_v30 = vpop.permute.xlu1 %1812 }
 0xf86   :  { %v1815_v34 = vmul.f32 %v4452_v13, %v1813_v30 }
 0xf88   :  { %1817 = vrot.lane.b32.xlu1 %v1815_v34, %s4623_s17 }
 0xfdb   :  { %v1642_v36 = vpop.permute.xlu0 %1641 }
 0xfdc   :  { %v5141_v29 = vadd.f32 %v4454_v31, %v1642_v36 }
 0xfde   :  { %1646 = vrot.lane.b32.xlu0 %v5141_v29, %s4621_s3 }
 0xffa   :  { %v1818_v32 = vpop.permute.xlu1 %1817 }
 0xffb   :  { %v5145_v40 = vadd.f32 %v4456_v52, %v1818_v32 }
 0xffd   :  { %1822 = vrot.lane.b32.xlu1 %v5145_v40, %s4621_s3 }
0x1050   :  { %v1647_v41 = vpop.permute.xlu0 %1646 }
0x1051   :  { %3945 = vmatmul.mubr.msk.f32.vlgmr.msra.gmra.mrb[18].mxu1 %vm318_vm9, %v1647_v41  ;;  %3978 = vmatmul.mubr.msk.f32.vlgmr.msra.gmra.mrb[32].mxu0 %vm318_vm9, %v1647_v41 }
0x1052   :  { %4275 = vmatpush3.bf16.msra.mxu1 %v4822_v48  ;;  %4293 = vmatpush3.bf16.msra.mxu0 %v4754_v6 }
0x1053   :  { %4276 = vmatprep.subr.bf16.mxu1 %v4617_v1  ;;  %4294 = vmatprep.subr.bf16.mxu0 %v4617_v1 }
0x1054   :  { %3966 = vmatprep.mubr.msk.f32.mxu1 %vm4618_vm0, %v4619_v2  ;;  %3999 = vmatprep.mubr.msk.f32.mxu0 %vm4618_vm0, %v4619_v2 }
0x1056   :  { %4278 = vmatpush3.bf16.msra.mxu1 %v4828_v50  ;;  %4296 = vmatpush3.bf16.msra.mxu0 %v4763_v11 }
0x1057   :  { %4285 = vmatprep.subr.bf16.mxu1 %v4617_v1  ;;  %4303 = vmatprep.subr.bf16.mxu0 %v4617_v1 }
0x106f   :  { %v1823_v42 = vpop.permute.xlu1 %1822 }
0x1070   :  { %3967 = vmatmul.mubr.msk.f32.vlgmr.msra.gmra.mrb[20].mxu1 %vm318_vm9, %v1823_v42  ;;  %4000 = vmatmul.mubr.msk.f32.vlgmr.msra.gmra.mrb[34].mxu0 %vm318_vm9, %v1823_v42 }
0x1071   :  { %4287 = vmatpush3.bf16.msra.mxu1 %v4959_v22  ;;  %4305 = vmatpush3.bf16.msra.mxu0 %v4864_v63 }
0x1072   :  { %4288 = vmatprep.subr.bf16.mxu1 %v4617_v1  ;;  %4306 = vmatprep.subr.bf16.mxu0 %v4617_v1 }
0x1073   :  { %3988 = vmatprep.mubr.msk.f32.mxu1 %vm4618_vm0, %v4619_v2  ;;  %4021 = vmatprep.mubr.msk.f32.mxu0 %vm4618_vm0, %v4619_v2 }
0x1075   :  { %4290 = vmatpush3.bf16.msra.mxu1 %v4965_v24  ;;  %4308 = vmatpush3.bf16.msra.mxu0 %v4874_v7 }
0x1076   :  { %4297 = vmatprep.subr.bf16.mxu1 %v4617_v1  ;;  %4315 = vmatprep.subr.bf16.mxu0 %v4617_v1 }
0x1124   :  { %v1716_v43 = vpop.f32.mrb[18].mxu1  ;;  %v1962_v45 = vpop.f32.mrb[32].mxu0 }
0x1125   :  { %v1717_v46 = vadd.f32 %v1716_v43, %v5010_v38  ;;  %v1963_v47 = vadd.f32 %v1962_v45, %v4920_v27  ;;  %v3946_v49 = vpop.f32.mrb[19].mxu1  ;;  %v3979_v51 = vpop.f32.mrb[33].mxu0 }
0x1126   :  { %v5238_v51 = vld [vmem:[#allocation6] sm:$0xff] }
0x1127   :  { %1720 = vst [vmem:[%s5419_s11 + $0x18] sm:$0xff] %v1717_v46  ;;  %1974 = vrot.lane.b32.xlu0 %v1963_v47, %s4621_s3 }
0x1143   :  { %v1892_v53 = vpop.f32.mrb[20].mxu1  ;;  %v2138_v54 = vpop.f32.mrb[34].mxu0 }
0x1144   :  { %v2139_v55 = vadd.f32 %v2138_v54, %v4783_v17  ;;  %v3968_v56 = vpop.f32.mrb[21].mxu1  ;;  %v4001_v57 = vpop.f32.mrb[35].mxu0  ;;  %v1893_v58 = vadd.f32 %v1892_v53, %v4939_v44 }
0x1146   :  { %2150 = vrot.lane.b32.xlu1 %v2139_v55, %s4621_s3  ;;  %v1966_v59 = vadd.f32 %v1963_v47, %v1893_v58  ;;  %v2142_v4 = vadd.f32 %v2139_v55, %v2071_v3 }
0x1148   :  { %v3523_v60 = vmul.f32 -1.442695, %v1966_v59  ;;  %v3526_v62 = vmul.f32 -1.442695, %v2142_v4 }
0x114a   :  { %4457 = vpow2.f32 %v3523_v60  ;;  %v5243_v60 = vld [vmem:[#allocation4] sm:$0xff] }
0x1154   :  { %v4458_v61 = vpop.eup %4457 }
0x1155   :  { %v1970_v0 = vadd.f32 1.0, %v4458_v61  ;;  %v2421_v61 = vadd.f32 %v5243_v60, %v4928_v35 }
0x1157   :  { %4459 = vrcp.f32 %v1970_v0 }
0x1158   :  { %4461 = vpow2.f32 %v3526_v62 }
0x1161   :  { %v4460_v5 = vpop.eup %4459 }
0x1162   :  { %v4462_v9 = vpop.eup %4461 }
0x1163   :  { %v2146_v10 = vadd.f32 1.0, %v4462_v9 }
0x1165   :  { %4463 = vrcp.f32 %v2146_v10 }
0x116f   :  { %v4464_v12 = vpop.eup %4463 }
0x1199   :  { %v1975_v8 = vpop.permute.xlu0 %1974 }
0x119a   :  { %v1977_v17 = vmul.f32 %v4460_v5, %v1975_v8 }
0x119c   :  { %1979 = vrot.lane.b32.xlu0 %v1977_v17, %s4621_s3 }
0x11b8   :  { %v2151_v13 = vpop.permute.xlu1 %2150 }
0x11b9   :  { %v2153_v15 = vmul.f32 %v4464_v12, %v2151_v13 }
0x11bb   :  { %2155 = vrot.lane.b32.xlu1 %v2153_v15, %s4621_s3 }
0x120e   :  { %v1980_v14 = vpop.permute.xlu0 %1979 }
0x120f   :  { %v1982_v16 = vadd.f32 %v1980_v14, %v1893_v58 }
0x1211   :  { %4465 = vtanh.f32 %v1982_v16 }
0x121b   :  { %v4466_v21 = vpop.eup %4465 }
0x121c   :  { %v1984_v33 = vsub.f32 %v5141_v29, %v4466_v21 }
0x121e   :  { %1986 = vrot.lane.b32.xlu0 %v1984_v33, %s4622_s1 }
0x122d   :  { %v2156_v23 = vpop.permute.xlu1 %2155 }
0x122e   :  { %v2158_v31 = vadd.f32 %v2156_v23, %v2071_v3 }
0x1230   :  { %4467 = vtanh.f32 %v2158_v31 }
0x123a   :  { %v4468_v18 = vpop.eup %4467 }
0x123b   :  { %v2160_v19 = vsub.f32 %v5145_v40, %v4468_v18 }
0x123d   :  { %2162 = vrot.lane.b32.xlu1 %v2160_v19, %s4622_s1 }
0x1290   :  { %v1987_v20 = vpop.permute.xlu0 %1986 }
0x1291   :  { %v1989_v52 = vmul.f32 %v4460_v5, %v1987_v20 }
0x1293   :  { %1991 = vrot.lane.b32.xlu0 %v1989_v52, %s4623_s17 }
0x12af   :  { %v2163_v25 = vpop.permute.xlu1 %2162 }
0x12b0   :  { %v2165_v26 = vmul.f32 %v4464_v12, %v2163_v25 }
0x12b2   :  { %2167 = vrot.lane.b32.xlu1 %v2165_v26, %s4623_s17 }
0x1305   :  { %v1992_v28 = vpop.permute.xlu0 %1991 }
0x1306   :  { %v5196_v30 = vadd.f32 %v4466_v21, %v1992_v28 }
0x1308   :  { %1996 = vrot.lane.b32.xlu0 %v5196_v30, %s4621_s3 }
0x1324   :  { %v2168_v34 = vpop.permute.xlu1 %2167 }
0x1325   :  { %v5200_v36 = vadd.f32 %v4468_v18, %v2168_v34 }
0x1327   :  { %2172 = vrot.lane.b32.xlu1 %v5200_v36, %s4621_s3 }
0x137a   :  { %v1997_v29 = vpop.permute.xlu0 %1996 }
0x137b   :  { %3989 = vmatmul.mubr.msk.f32.vlgmr.msra.gmra.mrb[22].mxu1 %vm318_vm9, %v1997_v29  ;;  %4022 = vmatmul.mubr.msk.f32.vlgmr.msra.gmra.mrb[36].mxu0 %vm318_vm9, %v1997_v29 }
0x137c   :  { %4299 = vmatpush3.bf16.msra.mxu1 %v4822_v48  ;;  %4317 = vmatpush3.bf16.msra.mxu0 %v4754_v6 }
0x137d   :  { %4300 = vmatprep.subr.bf16.mxu1 %v4617_v1  ;;  %4318 = vmatprep.subr.bf16.mxu0 %v4617_v1 }
0x137e   :  { %4010 = vmatprep.mubr.msk.f32.mxu1 %vm4618_vm0, %v4619_v2  ;;  %4043 = vmatprep.mubr.msk.f32.mxu0 %vm4618_vm0, %v4619_v2 }
0x1380   :  { %4302 = vmatpush3.bf16.msra.mxu1 %v4828_v50  ;;  %4320 = vmatpush3.bf16.msra.mxu0 %v4763_v11 }
0x1381   :  { %4309 = vmatprep.subr.bf16.mxu1 %v4617_v1  ;;  %4327 = vmatprep.subr.bf16.mxu0 %v4617_v1 }
0x1399   :  { %v2173_v32 = vpop.permute.xlu1 %2172 }
0x139a   :  { %4011 = vmatmul.mubr.msk.f32.vlgmr.msra.gmra.mrb[24].mxu1 %vm318_vm9, %v2173_v32  ;;  %4044 = vmatmul.mubr.msk.f32.vlgmr.msra.gmra.mrb[38].mxu0 %vm318_vm9, %v2173_v32  ;;  %v5292_v32 = vld [vmem:[#allocation7] sm:$0xff] }
0x139b   :  { %4311 = vmatpush3.bf16.msra.mxu1 %v4959_v22  ;;  %4329 = vmatpush3.bf16.msra.mxu0 %v4864_v63 }
0x139c   :  { %4312 = vmatprep.subr.bf16.mxu1 %v4617_v1  ;;  %4330 = vmatprep.subr.bf16.mxu0 %v4617_v1 }
0x139d   :  { %4032 = vmatprep.mubr.msk.f32.mxu1 %vm4618_vm0, %v4619_v2  ;;  %4065 = vmatprep.mubr.msk.f32.mxu0 %vm4618_vm0, %v4619_v2 }
0x139f   :  { %4314 = vmatpush3.bf16.msra.mxu1 %v4965_v24  ;;  %4332 = vmatpush3.bf16.msra.mxu0 %v4874_v7 }
0x13a0   :  { %4321 = vmatprep.subr.bf16.mxu1 %v4617_v1  ;;  %4339 = vmatprep.subr.bf16.mxu0 %v4617_v1 }
0x144e   :  { %v2066_v40 = vpop.f32.mrb[22].mxu1  ;;  %v2312_v41 = vpop.f32.mrb[36].mxu0 }
0x144f   :  { %v2067_v42 = vadd.f32 %v2066_v40, %v5010_v38  ;;  %v2313_v43 = vadd.f32 %v2312_v41, %v4920_v27  ;;  %v3990_v45 = vpop.f32.mrb[23].mxu1  ;;  %v4023_v46 = vpop.f32.mrb[37].mxu0 }
0x1451   :  { %2070 = vst [vmem:[%s5419_s11 + $0x20] sm:$0xff] %v2067_v42  ;;  %2324 = vrot.lane.b32.xlu0 %v2313_v43, %s4621_s3 }
0x146d   :  { %v2242_v47 = vpop.f32.mrb[24].mxu1  ;;  %v2488_v49 = vpop.f32.mrb[38].mxu0 }
0x146e   :  { %v2489_v53 = vadd.f32 %v5238_v51, %v2488_v49  ;;  %v4012_v54 = vpop.f32.mrb[25].mxu1  ;;  %v4045_v55 = vpop.f32.mrb[39].mxu0  ;;  %v2243_v27 = vadd.f32 %v2242_v47, %v4939_v44 }
0x1470   :  { %2500 = vrot.lane.b32.xlu1 %v2489_v53, %s4621_s3  ;;  %v2316_v56 = vadd.f32 %v2313_v43, %v2243_v27  ;;  %v2492_v0 = vadd.f32 %v2489_v53, %v2421_v61 }
0x1472   :  { %v3529_v57 = vmul.f32 -1.442695, %v2316_v56  ;;  %v3532_v4 = vmul.f32 -1.442695, %v2492_v0 }
0x1474   :  { %4469 = vpow2.f32 %v3529_v57  ;;  %v2771_v57 = vadd.f32 %v5243_v60, %v4930_v37 }
0x147e   :  { %v4470_v58 = vpop.eup %4469 }
0x147f   :  { %v2320_v59 = vadd.f32 1.0, %v4470_v58 }
0x1481   :  { %4471 = vrcp.f32 %v2320_v59 }
0x1482   :  { %4473 = vpow2.f32 %v3532_v4 }
0x148b   :  { %v4472_v3 = vpop.eup %4471 }
0x148c   :  { %v4474_v44 = vpop.eup %4473 }
0x148d   :  { %v2496_v8 = vadd.f32 1.0, %v4474_v44 }
0x148f   :  { %4475 = vrcp.f32 %v2496_v8 }
0x1499   :  { %v4476_v17 = vpop.eup %4475 }
0x14c3   :  { %v2325_v5 = vpop.permute.xlu0 %2324 }
0x14c4   :  { %v2327_v62 = vmul.f32 %v4472_v3, %v2325_v5 }
0x14c6   :  { %2329 = vrot.lane.b32.xlu0 %v2327_v62, %s4621_s3 }
0x14e2   :  { %v2501_v9 = vpop.permute.xlu1 %2500 }
0x14e3   :  { %v2503_v10 = vmul.f32 %v4476_v17, %v2501_v9 }
0x14e5   :  { %2505 = vrot.lane.b32.xlu1 %v2503_v10, %s4621_s3 }
0x1538   :  { %v2330_v12 = vpop.permute.xlu0 %2329 }
0x1539   :  { %v2332_v13 = vadd.f32 %v2330_v12, %v2243_v27 }
0x153b   :  { %4477 = vtanh.f32 %v2332_v13 }
0x1545   :  { %v4478_v35 = vpop.eup %4477 }
0x1546   :  { %v2334_v15 = vsub.f32 %v5196_v30, %v4478_v35 }
0x1548   :  { %2336 = vrot.lane.b32.xlu0 %v2334_v15, %s4622_s1 }
0x1557   :  { %v2506_v14 = vpop.permute.xlu1 %2505 }
0x1558   :  { %v2508_v16 = vadd.f32 %v2506_v14, %v2421_v61 }
0x155a   :  { %4479 = vtanh.f32 %v2508_v16 }
0x1564   :  { %v4480_v21 = vpop.eup %4479 }
0x1565   :  { %v2510_v33 = vsub.f32 %v5200_v36, %v4480_v21 }
0x1567   :  { %2512 = vrot.lane.b32.xlu1 %v2510_v33, %s4622_s1 }
0x15ba   :  { %v2337_v23 = vpop.permute.xlu0 %2336 }
0x15bb   :  { %v2339_v31 = vmul.f32 %v4472_v3, %v2337_v23 }
0x15bd   :  { %2341 = vrot.lane.b32.xlu0 %v2339_v31, %s4623_s17 }
0x15d9   :  { %v2513_v18 = vpop.permute.xlu1 %2512 }
0x15da   :  { %v2515_v19 = vmul.f32 %v4476_v17, %v2513_v18 }
0x15dc   :  { %2517 = vrot.lane.b32.xlu1 %v2515_v19, %s4623_s17 }
0x162f   :  { %v2342_v20 = vpop.permute.xlu0 %2341 }
0x1630   :  { %v5255_v52 = vadd.f32 %v4478_v35, %v2342_v20 }
0x1632   :  { %2346 = vrot.lane.b32.xlu0 %v5255_v52, %s4621_s3 }
0x164e   :  { %v2518_v25 = vpop.permute.xlu1 %2517 }
0x164f   :  { %v5259_v26 = vadd.f32 %v4480_v21, %v2518_v25 }
0x1651   :  { %2522 = vrot.lane.b32.xlu1 %v5259_v26, %s4621_s3 }
0x16a4   :  { %v2347_v28 = vpop.permute.xlu0 %2346 }
0x16a5   :  { %4033 = vmatmul.mubr.msk.f32.vlgmr.msra.gmra.mrb[26].mxu1 %vm318_vm9, %v2347_v28  ;;  %4066 = vmatmul.mubr.msk.f32.vlgmr.msra.gmra.mrb[40].mxu0 %vm318_vm9, %v2347_v28 }
0x16a6   :  { %4323 = vmatpush3.bf16.msra.mxu1 %v4822_v48  ;;  %4341 = vmatpush3.bf16.msra.mxu0 %v4754_v6 }
0x16a7   :  { %4324 = vmatprep.subr.bf16.mxu1 %v4617_v1  ;;  %4342 = vmatprep.subr.bf16.mxu0 %v4617_v1 }
0x16a8   :  { %4054 = vmatprep.mubr.msk.f32.mxu1 %vm4618_vm0, %v4619_v2  ;;  %4087 = vmatprep.mubr.msk.f32.mxu0 %vm4618_vm0, %v4619_v2 }
0x16aa   :  { %4326 = vmatpush3.bf16.msra.mxu1 %v4828_v50  ;;  %4344 = vmatpush3.bf16.msra.mxu0 %v4763_v11 }
0x16ab   :  { %4333 = vmatprep.subr.bf16.mxu1 %v4617_v1  ;;  %4351 = vmatprep.subr.bf16.mxu0 %v4617_v1 }
0x16c3   :  { %v2523_v30 = vpop.permute.xlu1 %2522 }
0x16c4   :  { %4055 = vmatmul.mubr.msk.f32.vlgmr.msra.gmra.mrb[28].mxu1 %vm318_vm9, %v2523_v30  ;;  %4088 = vmatmul.mubr.msk.f32.vlgmr.msra.gmra.mrb[42].mxu0 %vm318_vm9, %v2523_v30 }
0x16c5   :  { %4335 = vmatpush3.bf16.msra.mxu1 %v4959_v22  ;;  %4353 = vmatpush3.bf16.msra.mxu0 %v4864_v63 }
0x16c6   :  { %4336 = vmatprep.subr.bf16.mxu1 %v4617_v1  ;;  %4354 = vmatprep.subr.bf16.mxu0 %v4617_v1 }
0x16c7   :  { %4076 = vmatprep.mubr.msk.f32.mxu1 %vm4618_vm0, %v4619_v2  ;;  %4109 = vmatprep.mubr.msk.f32.mxu0 %vm4618_vm0, %v4619_v2 }
0x16c9   :  { %4338 = vmatpush3.bf16.msra.mxu1 %v4965_v24  ;;  %4356 = vmatpush3.bf16.msra.mxu0 %v4874_v7 }
0x16ca   :  { %4345 = vmatprep.subr.bf16.mxu1 %v4617_v1  ;;  %4363 = vmatprep.subr.bf16.mxu0 %v4617_v1 }
0x1778   :  { %v2416_v34 = vpop.f32.mrb[26].mxu1  ;;  %v2662_v36 = vpop.f32.mrb[40].mxu0 }
0x1779   :  { %v2417_v29 = vadd.f32 %v2416_v34, %v5010_v38  ;;  %v2663_v40 = vadd.f32 %v5292_v32, %v2662_v36  ;;  %v4034_v41 = vpop.f32.mrb[27].mxu1  ;;  %v4067_v42 = vpop.f32.mrb[41].mxu0  ;;  %v5304_v38 = vld [vmem:[%s5414_s6] sm:$0xff] }
0x177b   :  { %2420 = vst [vmem:[%s5419_s11 + $0x28] sm:$0xff] %v2417_v29  ;;  %2674 = vrot.lane.b32.xlu0 %v2663_v40, %s4621_s3 }
0x1797   :  { %v2592_v43 = vpop.f32.mrb[28].mxu1  ;;  %v2838_v45 = vpop.f32.mrb[42].mxu0 }
0x1798   :  { %v2839_v46 = vadd.f32 %v5238_v51, %v2838_v45  ;;  %v4056_v47 = vpop.f32.mrb[29].mxu1  ;;  %v4089_v49 = vpop.f32.mrb[43].mxu0  ;;  %v2593_v53 = vadd.f32 %v5304_v38, %v2592_v43 }
0x1799   :  { %v3121_v47 = vadd.f32 %v5243_v60, %v4932_v39 }
0x179a   :  { %2850 = vrot.lane.b32.xlu1 %v2839_v46, %s4621_s3  ;;  %v2666_v54 = vadd.f32 %v2663_v40, %v2593_v53  ;;  %v2842_v58 = vadd.f32 %v2839_v46, %v2771_v57 }
0x179c   :  { %v3535_v55 = vmul.f32 -1.442695, %v2666_v54  ;;  %v3538_v61 = vmul.f32 -1.442695, %v2842_v58 }
0x179e   :  { %4481 = vpow2.f32 %v3535_v55 }
0x17a8   :  { %v4482_v27 = vpop.eup %4481 }
0x17a9   :  { %v2670_v56 = vadd.f32 1.0, %v4482_v27 }
0x17ab   :  { %4483 = vrcp.f32 %v2670_v56 }
0x17ac   :  { %4485 = vpow2.f32 %v3538_v61 }
0x17b5   :  { %v4484_v59 = vpop.eup %4483 }
0x17b6   :  { %v4486_v4 = vpop.eup %4485 }
0x17b7   :  { %v2846_v5 = vadd.f32 1.0, %v4486_v4 }
0x17b9   :  { %4487 = vrcp.f32 %v2846_v5 }
0x17c3   :  { %v4488_v62 = vpop.eup %4487 }
0x17ed   :  { %v2675_v0 = vpop.permute.xlu0 %2674 }
0x17ee   :  { %v2677_v3 = vmul.f32 %v4484_v59, %v2675_v0 }
0x17f0   :  { %2679 = vrot.lane.b32.xlu0 %v2677_v3, %s4621_s3 }
0x180c   :  { %v2851_v44 = vpop.permute.xlu1 %2850 }
0x180d   :  { %v2853_v8 = vmul.f32 %v4488_v62, %v2851_v44 }
0x180f   :  { %2855 = vrot.lane.b32.xlu1 %v2853_v8, %s4621_s3 }
0x1862   :  { %v2680_v17 = vpop.permute.xlu0 %2679 }
0x1863   :  { %v2682_v9 = vadd.f32 %v2680_v17, %v2593_v53 }
0x1865   :  { %4489 = vtanh.f32 %v2682_v9 }
0x186f   :  { %v4490_v37 = vpop.eup %4489 }
0x1870   :  { %v2684_v10 = vsub.f32 %v5255_v52, %v4490_v37 }
0x1872   :  { %2686 = vrot.lane.b32.xlu0 %v2684_v10, %s4622_s1 }
0x1881   :  { %v2856_v12 = vpop.permute.xlu1 %2855 }
0x1882   :  { %v2858_v13 = vadd.f32 %v2856_v12, %v2771_v57 }
0x1884   :  { %4491 = vtanh.f32 %v2858_v13 }
0x188e   :  { %v4492_v35 = vpop.eup %4491 }
0x188f   :  { %v2860_v15 = vsub.f32 %v5259_v26, %v4492_v35 }
0x1891   :  { %2862 = vrot.lane.b32.xlu1 %v2860_v15, %s4622_s1 }
0x18e4   :  { %v2687_v14 = vpop.permute.xlu0 %2686 }
0x18e5   :  { %v2689_v16 = vmul.f32 %v4484_v59, %v2687_v14 }
0x18e7   :  { %2691 = vrot.lane.b32.xlu0 %v2689_v16, %s4623_s17 }
0x1903   :  { %v2863_v21 = vpop.permute.xlu1 %2862 }
0x1904   :  { %v2865_v33 = vmul.f32 %v4488_v62, %v2863_v21 }
0x1906   :  { %2867 = vrot.lane.b32.xlu1 %v2865_v33, %s4623_s17 }
0x1959   :  { %v2692_v23 = vpop.permute.xlu0 %2691 }
0x195a   :  { %v5317_v31 = vadd.f32 %v4490_v37, %v2692_v23 }
0x195c   :  { %2696 = vrot.lane.b32.xlu0 %v5317_v31, %s4621_s3 }
0x1978   :  { %v2868_v18 = vpop.permute.xlu1 %2867 }
0x1979   :  { %v5321_v19 = vadd.f32 %v4492_v35, %v2868_v18 }
0x197b   :  { %2872 = vrot.lane.b32.xlu1 %v5321_v19, %s4621_s3 }
0x19ce   :  { %v2697_v20 = vpop.permute.xlu0 %2696 }
0x19cf   :  { %4077 = vmatmul.mubr.msk.f32.vlgmr.msra.gmra.mrb[30].mxu1 %vm318_vm9, %v2697_v20  ;;  %4110 = vmatmul.mubr.msk.f32.vlgmr.msra.gmra.mrb[44].mxu0 %vm318_vm9, %v2697_v20 }
0x19d0   :  { %4347 = vmatpush3.bf16.msra.mxu1 %v4822_v48  ;;  %4365 = vmatpush3.bf16.msra.mxu0 %v4754_v6 }
0x19d1   :  { %4348 = vmatprep.subr.bf16.mxu1 %v4617_v1  ;;  %4366 = vmatprep.subr.bf16.mxu0 %v4617_v1 }
0x19d2   :  { %4098 = vmatprep.mubr.msk.f32.mxu1 %vm4618_vm0, %v4619_v2  ;;  %4131 = vmatprep.mubr.msk.f32.mxu0 %vm4618_vm0, %v4619_v2 }
0x19d4   :  { %4350 = vmatpush3.bf16.msra.mxu1 %v4828_v50  ;;  %4368 = vmatpush3.bf16.msra.mxu0 %v4763_v11 }
0x19d5   :  { %4357 = vmatprep.subr.bf16.mxu1 %v4617_v1  ;;  %4375 = vmatprep.subr.bf16.mxu0 %v4617_v1 }
0x19ed   :  { %v2873_v52 = vpop.permute.xlu1 %2872 }
0x19ee   :  { %4099 = vmatmul.mubr.msk.f32.vlgmr.msra.gmra.mrb[32].mxu1 %vm318_vm9, %v2873_v52  ;;  %4132 = vmatmul.mubr.msk.f32.vlgmr.msra.gmra.mrb[46].mxu0 %vm318_vm9, %v2873_v52 }
0x19ef   :  { %4359 = vmatpush3.bf16.msra.mxu1 %v4959_v22  ;;  %4377 = vmatpush3.bf16.msra.mxu0 %v4864_v63  ;;  %v5355_v63 = vld [vmem:[%s5418_s10] sm:$0xff] }
0x19f0   :  { %4360 = vmatprep.subr.bf16.mxu1 %v4617_v1  ;;  %4378 = vmatprep.subr.bf16.mxu0 %v4617_v1 }
0x19f1   :  { %4120 = vmatprep.mubr.msk.f32.mxu1 %vm4618_vm0, %v4619_v2  ;;  %4153 = vmatprep.mubr.msk.f32.mxu0 %vm4618_vm0, %v4619_v2 }
0x19f3   :  { %4362 = vmatpush3.bf16.msra.mxu1 %v4965_v24  ;;  %4380 = vmatpush3.bf16.msra.mxu0 %v4874_v7 }
0x19f4   :  { %4369 = vmatprep.subr.bf16.mxu1 %v4617_v1 }
0x1aa2   :  { %v2766_v6 = vpop.f32.mrb[30].mxu1  ;;  %v3012_v11 = vpop.f32.mrb[44].mxu0 }
0x1aa3   :  { %v2767_v25 = vadd.f32 %v5355_v63, %v2766_v6  ;;  %v3013_v26 = vadd.f32 %v5292_v32, %v3012_v11  ;;  %v4078_v28 = vpop.f32.mrb[31].mxu1  ;;  %v4111_v30 = vpop.f32.mrb[45].mxu0 }
0x1aa5   :  { %2770 = vst [vmem:[%s5419_s11 + $0x30] sm:$0xff] %v2767_v25  ;;  %3024 = vrot.lane.b32.xlu0 %v3013_v26, %s4621_s3 }
0x1ac1   :  { %v2942_v7 = vpop.f32.mrb[32].mxu1  ;;  %v3188_v34 = vpop.f32.mrb[46].mxu0 }
0x1ac2   :  { %v3189_v36 = vadd.f32 %v5238_v51, %v3188_v34  ;;  %v4100_v29 = vpop.f32.mrb[33].mxu1  ;;  %v4133_v40 = vpop.f32.mrb[47].mxu0  ;;  %v2943_v41 = vadd.f32 %v5304_v38, %v2942_v7 }
0x1ac4   :  { %3200 = vrot.lane.b32.xlu1 %v3189_v36, %s4621_s3  ;;  %v3016_v42 = vadd.f32 %v3013_v26, %v2943_v41  ;;  %v3192_v49 = vadd.f32 %v3189_v36, %v3121_v47 }
0x1ac6   :  { %v3541_v43 = vmul.f32 -1.442695, %v3016_v42  ;;  %v3544_v54 = vmul.f32 -1.442695, %v3192_v49 }
0x1ac8   :  { %4493 = vpow2.f32 %v3541_v43 }
0x1ad2   :  { %v4494_v45 = vpop.eup %4493 }
0x1ad3   :  { %v3020_v46 = vadd.f32 1.0, %v4494_v45 }
0x1ad5   :  { %4495 = vrcp.f32 %v3020_v46 }
0x1ad6   :  { %4497 = vpow2.f32 %v3544_v54 }
0x1adf   :  { %v4496_v53 = vpop.eup %4495 }
0x1ae0   :  { %v4498_v27 = vpop.eup %4497 }
0x1ae1   :  { %v3196_v56 = vadd.f32 1.0, %v4498_v27 }
0x1ae3   :  { %4499 = vrcp.f32 %v3196_v56 }
0x1aed   :  { %v4500_v57 = vpop.eup %4499 }
0x1b17   :  { %v3025_v55 = vpop.permute.xlu0 %3024 }
0x1b18   :  { %v3027_v51 = vmul.f32 %v4496_v53, %v3025_v55 }
0x1b1a   :  { %3029 = vrot.lane.b32.xlu0 %v3027_v51, %s4621_s3 }
0x1b36   :  { %v3201_v58 = vpop.permute.xlu1 %3200 }
0x1b37   :  { %v3203_v59 = vmul.f32 %v4500_v57, %v3201_v58 }
0x1b39   :  { %3205 = vrot.lane.b32.xlu1 %v3203_v59, %s4621_s3 }
0x1b8c   :  { %v3030_v61 = vpop.permute.xlu0 %3029 }
0x1b8d   :  { %v3032_v0 = vadd.f32 %v3030_v61, %v2943_v41 }
0x1b8f   :  { %4501 = vtanh.f32 %v3032_v0 }
0x1b99   :  { %v4502_v39 = vpop.eup %4501 }
0x1b9a   :  { %v3034_v60 = vsub.f32 %v5317_v31, %v4502_v39 }
0x1b9c   :  { %3036 = vrot.lane.b32.xlu0 %v3034_v60, %s4622_s1 }
0x1bab   :  { %v3206_v3 = vpop.permute.xlu1 %3205 }
0x1bac   :  { %v3208_v4 = vadd.f32 %v3206_v3, %v3121_v47 }
0x1bae   :  { %4503 = vtanh.f32 %v3208_v4 }
0x1bb8   :  { %v4504_v5 = vpop.eup %4503 }
0x1bb9   :  { %v3210_v62 = vsub.f32 %v5321_v19, %v4504_v5 }
0x1bbb   :  { %3212 = vrot.lane.b32.xlu1 %v3210_v62, %s4622_s1 }
0x1c0e   :  { %v3037_v44 = vpop.permute.xlu0 %3036 }
0x1c0f   :  { %v3039_v8 = vmul.f32 %v4496_v53, %v3037_v44 }
0x1c11   :  { %3041 = vrot.lane.b32.xlu0 %v3039_v8, %s4623_s17 }
0x1c2d   :  { %v3213_v17 = vpop.permute.xlu1 %3212 }
0x1c2e   :  { %v3215_v9 = vmul.f32 %v4500_v57, %v3213_v17 }
0x1c30   :  { %3217 = vrot.lane.b32.xlu1 %v3215_v9, %s4623_s17 }
0x1c83   :  { %v3042_v37 = vpop.permute.xlu0 %3041 }
0x1c84   :  { %v3044_v10 = vadd.f32 %v4502_v39, %v3042_v37 }
0x1c86   :  { %3046 = vrot.lane.b32.xlu0 %v3044_v10, %s4621_s3 }
0x1ca2   :  { %v3218_v12 = vpop.permute.xlu1 %3217 }
0x1ca3   :  { %v3220_v13 = vadd.f32 %v4504_v5, %v3218_v12 }
0x1ca5   :  { %3222 = vrot.lane.b32.xlu1 %v3220_v13, %s4621_s3 }
0x1cf8   :  { %v3047_v35 = vpop.permute.xlu0 %3046 }
0x1cf9   :  { %4121 = vmatmul.mubr.msk.f32.vlgmr.msra.gmra.mrb[34].mxu1 %vm318_vm9, %v3047_v35  ;;  %4154 = vmatmul.mubr.msk.f32.vlgmr.msra.gmra.mrb[48].mxu0 %vm318_vm9, %v3047_v35 }
0x1cfa   :  { %4371 = vmatpush3.bf16.msra.mxu1 %v4822_v48  ;;  %4142 = vmatprep.mubr.msk.f32.mxu1 %vm4618_vm0, %v4619_v2 }
0x1cfb   :  { %4372 = vmatprep.subr.bf16.mxu1 %v4617_v1 }
0x1cfe   :  { %4374 = vmatpush3.bf16.msra.mxu1 %v4828_v50 }
0x1cff   :  { %4381 = vmatprep.subr.bf16.mxu1 %v4617_v1 }
0x1d17   :  { %v3223_v15 = vpop.permute.xlu1 %3222 }
0x1d18   :  { %4143 = vmatmul.mubr.msk.f32.vlgmr.msra.gmra.mrb[36].mxu1 %vm318_vm9, %v3223_v15 }
0x1d19   :  { %4383 = vmatpush3.bf16.msra.mxu1 %v4959_v22  ;;  %4164 = vmatprep.mubr.msk.f32.mxu1 %vm4618_vm0, %v4619_v2 }
0x1d1a   :  { %4384 = vmatprep.subr.bf16.mxu1 %v4617_v1 }
0x1d1d   :  { %4386 = vmatpush3.bf16.msra.mxu1 %v4965_v24 }
0x1dcc   :  { %v3116_v48 = vpop.f32.mrb[34].mxu1  ;;  %v3362_v14 = vpop.f32.mrb[48].mxu0 }
0x1dcd   :  { %v3117_v16 = vadd.f32 %v5355_v63, %v3116_v48  ;;  %v3363_v50 = vadd.f32 %v5292_v32, %v3362_v14  ;;  %v4122_v21 = vpop.f32.mrb[35].mxu1  ;;  %v4155_v33 = vpop.f32.mrb[49].mxu0 }
0x1dcf   :  { %3120 = vst [vmem:[%s5419_s11 + $0x38] sm:$0xff] %v3117_v16  ;;  %3374 = vrot.lane.b32.xlu0 %v3363_v50, %s4621_s3 }
0x1deb   :  { %v3292_v22 = vpop.f32.mrb[36].mxu1 }
0x1dec   :  { %v4144_v2 = vpop.f32.mrb[37].mxu1  ;;  %v3293_v1 = vadd.f32 %v5304_v38, %v3292_v22 }
0x1dee   :  { %v3366_v23 = vadd.f32 %v3363_v50, %v3293_v1 }
0x1df0   :  { %v3547_v24 = vmul.f32 -1.442695, %v3366_v23 }
0x1df2   :  { %4505 = vpow2.f32 %v3547_v24 }
0x1dfc   :  { %v4506_v31 = vpop.eup %4505 }
0x1dfd   :  { %v3370_v18 = vadd.f32 1.0, %v4506_v31 }
0x1dff   :  { %4507 = vrcp.f32 %v3370_v18 }
0x1e09   :  { %v4508_v19 = vpop.eup %4507 }
0x1e41   :  { %v3375_v32 = vpop.permute.xlu0 %3374 }
0x1e42   :  { %v3377_v20 = vmul.f32 %v4508_v19, %v3375_v32 }
0x1e44   :  { %3379 = vrot.lane.b32.xlu1 %v3377_v20, %s4621_s3 }
0x1eb6   :  { %v3380_v52 = vpop.permute.xlu1 %3379 }
0x1eb7   :  { %v3382_v6 = vadd.f32 %v3380_v52, %v3293_v1 }
0x1eb9   :  { %4509 = vtanh.f32 %v3382_v6 }
0x1ec3   :  { %v4510_v11 = vpop.eup %4509 }
0x1ec4   :  { %v3384_v25 = vsub.f32 %v3044_v10, %v4510_v11 }
0x1ec6   :  { %3386 = vrot.lane.b32.xlu0 %v3384_v25, %s4622_s1 }
0x1f38   :  { %v3387_v26 = vpop.permute.xlu0 %3386 }
0x1f39   :  { %v3389_v38 = vmul.f32 %v4508_v19, %v3387_v26 }
0x1f3b   :  { %3391 = vrot.lane.b32.xlu1 %v3389_v38, %s4623_s17 }
0x1fad   :  { %v3392_v28 = vpop.permute.xlu1 %3391 }
0x1fae   :  { %v3394_v30 = vadd.f32 %v4510_v11, %v3392_v28 }
0x1fb0   :  { %3396 = vrot.lane.b32.xlu0 %v3394_v30, %s4621_s3 }
0x2022   :  { %v3397_v7 = vpop.permute.xlu0 %3396 }
0x2023   :  { %4165 = vmatmul.mubr.msk.f32.vlgmr.msra.gmra.mrb[38].mxu1 %vm318_vm9, %v3397_v7 }
0x20f6   :  { %v3466_v34 = vpop.f32.mrb[38].mxu1 }
0x20f7   :  { %v3467_v36 = vadd.f32 %v5355_v63, %v3466_v34  ;;  %v4166_v29 = vpop.f32.mrb[39].mxu1 }
0x20f9   :  { %3470 = vst [vmem:[%s5419_s11 + $0x40] sm:$0xff] %v3467_v36 }
0x20fa   :  { %3475 = vsyncpa [#allocation3], 1 }
0x20fb   :  { %3476 = vsyncpa [#allocation5], 1 }
0x20fc   :  { %3477 = vsyncpa [#allocation8], 1 }

</bundles_post_ra>
